<compile_context>
chip_gen: v7x
topology: tpu7x:2x2x1
jax: 0.10.0
libtpu: 0.0.40
codegen_flags: <defaults>
</compile_context>

<pallas_src>
import functools

import jax
import jax.numpy as jnp
from jax.experimental import pallas as pl
from jax.experimental.pallas import tpu as pltpu


# ----------------------------------------------------------------------------
# Pallas kernel: fused reflect-pad 3x3 conv + folded BN + ReLU
# ----------------------------------------------------------------------------
def _conv_bn_relu_kernel(x_ref, w_ref, scale_ref, shift_ref, o_ref, acc_ref,
                         *, wp, m_wide):
    """One (batch image, Cout tile) block.

    x_ref:     (1, Lp, Cin_p)     bf16   flattened padded activation
    w_ref:     (9, Cin_p, tn)     bf16   per-tap weight matrices
    scale_ref: (1, tn)            f32    folded BN scale
    shift_ref: (1, tn)            f32    folded BN shift (incl. conv bias)
    o_ref:     (1, m_wide, tn)    f32    "wide" output rows (junk cols stripped outside)
    acc_ref:   (m_wide, tn)       f32    VMEM accumulator scratch
    """
    acc_ref[...] = jnp.zeros_like(acc_ref)

    # 9 taps of the 3x3 kernel: each tap is a shifted slice of the flat padded
    # activation; contraction over Cin runs on the MXU with an f32 accumulator.
    for dh in range(3):
        for dw in range(3):
            off = dh * wp + dw                       # static Python int
            a = x_ref[0, off:off + m_wide, :]        # (m_wide, Cin_p) bf16
            acc_ref[...] += jnp.dot(a, w_ref[dh * 3 + dw],
                                    preferred_element_type=jnp.float32)

    # Fused folded-BatchNorm + ReLU epilogue (all f32).
    y = acc_ref[...] * scale_ref[...] + shift_ref[...]
    o_ref[0] = jnp.maximum(y, 0.0).astype(o_ref.dtype)


# ----------------------------------------------------------------------------
# Wrapper
# ----------------------------------------------------------------------------
def _round_up(x, m):
    return (x + m - 1) // m * m


def conv_block_forward(x_nhwc, w, bias, gamma, beta, mean, var, eps=1e-5):
    """x_nhwc: (N, H, W, Cin) f32.  w: (Cout, Cin, 3, 3).  Returns (N, H, W, Cout) f32."""
    N, H, W, Cin = x_nhwc.shape
    Cout = w.shape[0]
    wp = W + 2                       # padded width
    m_wide = H * wp                  # "wide" output rows per image (junk cols kept)

    # ---- activation: reflect pad, flatten padded spatial, pad Cin, cast bf16 ----
    xp = jnp.pad(x_nhwc, ((0, 0), (1, 1), (1, 1), (0, 0)), mode="reflect")
    flat_len = (H + 2) * wp
    cin_p = max(8, _round_up(Cin, 8))
    lp = _round_up(m_wide + 2 * wp + 2, 8)           # room for the largest tap offset
    xf = jnp.zeros((N, lp, cin_p), jnp.bfloat16)
    xf = xf.at[:, :flat_len, :Cin].set(xp.reshape(N, flat_len, Cin).astype(jnp.bfloat16))

    # ---- weights: (Cout, Cin, 3, 3) -> (9, Cin_p, Np) bf16, lane-dense Cout ----
    np_ = _round_up(Cout, 128)
    tn = 256 if np_ % 256 == 0 else 128
    wt = jnp.transpose(w, (2, 3, 1, 0)).reshape(9, Cin, Cout)     # (9, Cin, Cout)
    wt_p = jnp.zeros((9, cin_p, np_), jnp.bfloat16)
    wt_p = wt_p.at[:, :Cin, :Cout].set(wt.astype(jnp.bfloat16))

    # ---- fold conv bias + BatchNorm running stats into per-channel scale/shift ----
    scale = gamma / jnp.sqrt(var + eps)
    shift = beta + (bias - mean) * scale
    s_p = jnp.zeros((1, np_), jnp.float32).at[0, :Cout].set(scale)
    h_p = jnp.zeros((1, np_), jnp.float32).at[0, :Cout].set(shift)

    out = pl.pallas_call(
        functools.partial(_conv_bn_relu_kernel, wp=wp, m_wide=m_wide),
        out_shape=jax.ShapeDtypeStruct((N, m_wide, np_), jnp.float32),
        grid_spec=pltpu.PrefetchScalarGridSpec(
            num_scalar_prefetch=0,
            grid=(N, np_ // tn),
            in_specs=[
                pl.BlockSpec((1, lp, cin_p), lambda n, j: (n, 0, 0)),
                pl.BlockSpec((9, cin_p, tn), lambda n, j: (0, 0, j)),
                pl.BlockSpec((1, tn), lambda n, j: (0, j)),
                pl.BlockSpec((1, tn), lambda n, j: (0, j)),
            ],
            out_specs=pl.BlockSpec((1, m_wide, tn), lambda n, j: (n, 0, j)),
            scratch_shapes=[pltpu.VMEM((m_wide, tn), jnp.float32)],
        ),
        compiler_params=pltpu.CompilerParams(
            dimension_semantics=("parallel", "parallel")),
    )(xf, wt_p, s_p, h_p)

    # Strip the (W+2 - W) wrap-around junk columns and the Cout lane padding.
    y = out.reshape(N, H, wp, np_)[:, :, :W, :Cout]
    return y


# ----------------------------------------------------------------------------
# Pure-JAX reference (f32) for a correctness sanity check
# ----------------------------------------------------------------------------
def conv_block_reference(x_nhwc, w, bias, gamma, beta, mean, var, eps=1e-5):
    xp = jnp.pad(x_nhwc, ((0, 0), (1, 1), (1, 1), (0, 0)), mode="reflect")
    y = jax.lax.conv_general_dilated(
        xp, w, window_strides=(1, 1), padding="VALID",
        dimension_numbers=("NHWC", "OIHW", "NHWC"))
    y = y + bias
    y = (y - mean) * (gamma / jnp.sqrt(var + eps)) + beta
    return jnp.maximum(y, 0.0)


# ----------------------------------------------------------------------------
# Main
# ----------------------------------------------------------------------------
if __name__ == "__main__":
    IN_CH, OUT_CH = 4, 32
    N, H, W = 2, 16, 16

    key = jax.random.PRNGKey(0)
    k_x, k_w, k_b, k_g, k_be, k_m, k_v = jax.random.split(key, 7)

    # Input in PyTorch's NCHW convention; convert to NHWC at the boundary.
    x_nchw = jax.random.normal(k_x, (N, IN_CH, H, W), jnp.float32)
    x_nhwc = jnp.transpose(x_nchw, (0, 2, 3, 1))

    w = 0.1 * jax.random.normal(k_w, (OUT_CH, IN_CH, 3, 3), jnp.float32)
    b = 0.1 * jax.random.normal(k_b, (OUT_CH,), jnp.float32)
    gamma = 1.0 + 0.1 * jax.random.normal(k_g, (OUT_CH,), jnp.float32)
    beta = 0.1 * jax.random.normal(k_be, (OUT_CH,), jnp.float32)
    mean = 0.1 * jax.random.normal(k_m, (OUT_CH,), jnp.float32)
    var = 1.0 + 0.1 * jax.random.uniform(k_v, (OUT_CH,), jnp.float32)

    fwd = jax.jit(conv_block_forward)
    y_nhwc = fwd(x_nhwc, w, b, gamma, beta, mean, var)
    jax.block_until_ready(y_nhwc)
    y_nchw = jnp.transpose(y_nhwc, (0, 3, 1, 2))

    # Sanity checks against the f32 XLA reference (bf16 MXU -> loose tolerance).
    ref = jnp.transpose(
        conv_block_reference(x_nhwc, w, b, gamma, beta, mean, var), (0, 3, 1, 2))
    max_err = float(jnp.max(jnp.abs(y_nchw - ref)))

    assert y_nchw.shape == (N, OUT_CH, H, W), y_nchw.shape
    assert bool(jnp.all(jnp.isfinite(y_nchw)))
    assert bool(jnp.all(y_nchw >= 0.0))          # ReLU output range
    assert max_err < 0.1, f"max abs err vs reference: {max_err}"
    print("KERNEL_OK")
</pallas_src>

<mosaic_0001>
module attributes {stable_mosaic.version = 11 : i64} {
  func.func @_conv_bn_relu_kernel(%arg0: i32, %arg1: i32, %arg2: memref<1x328x8xbf16, #tpu.memory_space<vmem>>, %arg3: memref<9x8x128xbf16, #tpu.memory_space<vmem>>, %arg4: memref<1x128xf32, #tpu.memory_space<vmem>>, %arg5: memref<1x128xf32, #tpu.memory_space<vmem>>, %arg6: memref<1x288x128xf32, #tpu.memory_space<vmem>>, %arg7: memref<288x128xf32, #tpu.memory_space<vmem>>) attributes {dimension_semantics = [#tpu.dimension_semantics<parallel>, #tpu.dimension_semantics<parallel>], iteration_bounds = array<i64: 2, 1>, scalar_prefetch = 0 : i64, scratch_operands = 1 : i64, tpu.core_type = #tpu.core_type<tc>, window_params = [{transform_indices = @transform_0, window_bounds = array<i64: 1, 328, 8>}, {transform_indices = @transform_1, window_bounds = array<i64: 9, 8, 128>}, {transform_indices = @transform_2, window_bounds = array<i64: 1, 128>}, {transform_indices = @transform_3, window_bounds = array<i64: 1, 128>}, {transform_indices = @transform_4, window_bounds = array<i64: 1, 288, 128>}]} {
    %cst = arith.constant 0.000000e+00 : f32
    %0 = vector.broadcast %cst : f32 to vector<288x128xf32>
    %c0 = arith.constant 0 : index
    %c0_0 = arith.constant 0 : index
    %1 = vector.load %arg7[%c0, %c0_0] : memref<288x128xf32, #tpu.memory_space<vmem>>, vector<288x128xf32>
    tpu.vector_store %arg7[%c0, %c0_0], %0 {strides = array<i32>} : memref<288x128xf32, #tpu.memory_space<vmem>>, vector<288x128xf32>,
    %c0_1 = arith.constant 0 : index
    %c0_2 = arith.constant 0 : index
    %c0_3 = arith.constant 0 : index
    %2 = vector.load %arg2[%c0_1, %c0_2, %c0_3] : memref<1x328x8xbf16, #tpu.memory_space<vmem>>, vector<1x288x8xbf16>
    %3 = vector.shape_cast %2 : vector<1x288x8xbf16> to vector<288x8xbf16>
    %c0_4 = arith.constant 0 : index
    %c0_5 = arith.constant 0 : index
    %4 = vector.load %arg7[%c0_4, %c0_5] : memref<288x128xf32, #tpu.memory_space<vmem>>, vector<288x128xf32>
    %c0_6 = arith.constant 0 : index
    %c0_7 = arith.constant 0 : index
    %c0_8 = arith.constant 0 : index
    %5 = vector.load %arg3[%c0_6, %c0_7, %c0_8] : memref<9x8x128xbf16, #tpu.memory_space<vmem>>, vector<1x8x128xbf16>
    %6 = vector.shape_cast %5 : vector<1x8x128xbf16> to vector<8x128xbf16>
    %cst_9 = arith.constant dense<0.000000e+00> : vector<288x128xf32>
    %7 = tpu.matmul %3, %6, %cst_9 {dimension_numbers = #tpu.dot_dimension_numbers<[1], [0], [0], [1], [0, 0, 1, 1], [], []>} : vector<288x8xbf16>, vector<8x128xbf16>, vector<288x128xf32> -> vector<288x128xf32>
    %8 = arith.addf %4, %7 : vector<288x128xf32>
    %c0_10 = arith.constant 0 : index
    %c0_11 = arith.constant 0 : index
    %9 = vector.load %arg7[%c0_10, %c0_11] : memref<288x128xf32, #tpu.memory_space<vmem>>, vector<288x128xf32>
    tpu.vector_store %arg7[%c0_10, %c0_11], %8 {strides = array<i32>} : memref<288x128xf32, #tpu.memory_space<vmem>>, vector<288x128xf32>,
    %c0_12 = arith.constant 0 : index
    %c1 = arith.constant 1 : index
    %c0_13 = arith.constant 0 : index
    %10 = vector.load %arg2[%c0_12, %c1, %c0_13] : memref<1x328x8xbf16, #tpu.memory_space<vmem>>, vector<1x288x8xbf16>
    %11 = vector.shape_cast %10 : vector<1x288x8xbf16> to vector<288x8xbf16>
    %c0_14 = arith.constant 0 : index
    %c0_15 = arith.constant 0 : index
    %12 = vector.load %arg7[%c0_14, %c0_15] : memref<288x128xf32, #tpu.memory_space<vmem>>, vector<288x128xf32>
    %c1_16 = arith.constant 1 : index
    %c0_17 = arith.constant 0 : index
    %c0_18 = arith.constant 0 : index
    %13 = vector.load %arg3[%c1_16, %c0_17, %c0_18] : memref<9x8x128xbf16, #tpu.memory_space<vmem>>, vector<1x8x128xbf16>
    %14 = vector.shape_cast %13 : vector<1x8x128xbf16> to vector<8x128xbf16>
    %cst_19 = arith.constant dense<0.000000e+00> : vector<288x128xf32>
    %15 = tpu.matmul %11, %14, %cst_19 {dimension_numbers = #tpu.dot_dimension_numbers<[1], [0], [0], [1], [0, 0, 1, 1], [], []>} : vector<288x8xbf16>, vector<8x128xbf16>, vector<288x128xf32> -> vector<288x128xf32>
    %16 = arith.addf %12, %15 : vector<288x128xf32>
    %c0_20 = arith.constant 0 : index
    %c0_21 = arith.constant 0 : index
    %17 = vector.load %arg7[%c0_20, %c0_21] : memref<288x128xf32, #tpu.memory_space<vmem>>, vector<288x128xf32>
    tpu.vector_store %arg7[%c0_20, %c0_21], %16 {strides = array<i32>} : memref<288x128xf32, #tpu.memory_space<vmem>>, vector<288x128xf32>,
    %c0_22 = arith.constant 0 : index
    %c2 = arith.constant 2 : index
    %c0_23 = arith.constant 0 : index
    %18 = vector.load %arg2[%c0_22, %c2, %c0_23] : memref<1x328x8xbf16, #tpu.memory_space<vmem>>, vector<1x288x8xbf16>
    %19 = vector.shape_cast %18 : vector<1x288x8xbf16> to vector<288x8xbf16>
    %c0_24 = arith.constant 0 : index
    %c0_25 = arith.constant 0 : index
    %20 = vector.load %arg7[%c0_24, %c0_25] : memref<288x128xf32, #tpu.memory_space<vmem>>, vector<288x128xf32>
    %c2_26 = arith.constant 2 : index
    %c0_27 = arith.constant 0 : index
    %c0_28 = arith.constant 0 : index
    %21 = vector.load %arg3[%c2_26, %c0_27, %c0_28] : memref<9x8x128xbf16, #tpu.memory_space<vmem>>, vector<1x8x128xbf16>
    %22 = vector.shape_cast %21 : vector<1x8x128xbf16> to vector<8x128xbf16>
    %cst_29 = arith.constant dense<0.000000e+00> : vector<288x128xf32>
    %23 = tpu.matmul %19, %22, %cst_29 {dimension_numbers = #tpu.dot_dimension_numbers<[1], [0], [0], [1], [0, 0, 1, 1], [], []>} : vector<288x8xbf16>, vector<8x128xbf16>, vector<288x128xf32> -> vector<288x128xf32>
    %24 = arith.addf %20, %23 : vector<288x128xf32>
    %c0_30 = arith.constant 0 : index
    %c0_31 = arith.constant 0 : index
    %25 = vector.load %arg7[%c0_30, %c0_31] : memref<288x128xf32, #tpu.memory_space<vmem>>, vector<288x128xf32>
    tpu.vector_store %arg7[%c0_30, %c0_31], %24 {strides = array<i32>} : memref<288x128xf32, #tpu.memory_space<vmem>>, vector<288x128xf32>,
    %c0_32 = arith.constant 0 : index
    %c18 = arith.constant 18 : index
    %c0_33 = arith.constant 0 : index
    %26 = vector.load %arg2[%c0_32, %c18, %c0_33] : memref<1x328x8xbf16, #tpu.memory_space<vmem>>, vector<1x288x8xbf16>
    %27 = vector.shape_cast %26 : vector<1x288x8xbf16> to vector<288x8xbf16>
    %c0_34 = arith.constant 0 : index
    %c0_35 = arith.constant 0 : index
    %28 = vector.load %arg7[%c0_34, %c0_35] : memref<288x128xf32, #tpu.memory_space<vmem>>, vector<288x128xf32>
    %c3 = arith.constant 3 : index
    %c0_36 = arith.constant 0 : index
    %c0_37 = arith.constant 0 : index
    %29 = vector.load %arg3[%c3, %c0_36, %c0_37] : memref<9x8x128xbf16, #tpu.memory_space<vmem>>, vector<1x8x128xbf16>
    %30 = vector.shape_cast %29 : vector<1x8x128xbf16> to vector<8x128xbf16>
    %cst_38 = arith.constant dense<0.000000e+00> : vector<288x128xf32>
    %31 = tpu.matmul %27, %30, %cst_38 {dimension_numbers = #tpu.dot_dimension_numbers<[1], [0], [0], [1], [0, 0, 1, 1], [], []>} : vector<288x8xbf16>, vector<8x128xbf16>, vector<288x128xf32> -> vector<288x128xf32>
    %32 = arith.addf %28, %31 : vector<288x128xf32>
    %c0_39 = arith.constant 0 : index
    %c0_40 = arith.constant 0 : index
    %33 = vector.load %arg7[%c0_39, %c0_40] : memref<288x128xf32, #tpu.memory_space<vmem>>, vector<288x128xf32>
    tpu.vector_store %arg7[%c0_39, %c0_40], %32 {strides = array<i32>} : memref<288x128xf32, #tpu.memory_space<vmem>>, vector<288x128xf32>,
    %c0_41 = arith.constant 0 : index
    %c19 = arith.constant 19 : index
    %c0_42 = arith.constant 0 : index
    %34 = vector.load %arg2[%c0_41, %c19, %c0_42] : memref<1x328x8xbf16, #tpu.memory_space<vmem>>, vector<1x288x8xbf16>
    %35 = vector.shape_cast %34 : vector<1x288x8xbf16> to vector<288x8xbf16>
    %c0_43 = arith.constant 0 : index
    %c0_44 = arith.constant 0 : index
    %36 = vector.load %arg7[%c0_43, %c0_44] : memref<288x128xf32, #tpu.memory_space<vmem>>, vector<288x128xf32>
    %c4 = arith.constant 4 : index
    %c0_45 = arith.constant 0 : index
    %c0_46 = arith.constant 0 : index
    %37 = vector.load %arg3[%c4, %c0_45, %c0_46] : memref<9x8x128xbf16, #tpu.memory_space<vmem>>, vector<1x8x128xbf16>
    %38 = vector.shape_cast %37 : vector<1x8x128xbf16> to vector<8x128xbf16>
    %cst_47 = arith.constant dense<0.000000e+00> : vector<288x128xf32>
    %39 = tpu.matmul %35, %38, %cst_47 {dimension_numbers = #tpu.dot_dimension_numbers<[1], [0], [0], [1], [0, 0, 1, 1], [], []>} : vector<288x8xbf16>, vector<8x128xbf16>, vector<288x128xf32> -> vector<288x128xf32>
    %40 = arith.addf %36, %39 : vector<288x128xf32>
    %c0_48 = arith.constant 0 : index
    %c0_49 = arith.constant 0 : index
    %41 = vector.load %arg7[%c0_48, %c0_49] : memref<288x128xf32, #tpu.memory_space<vmem>>, vector<288x128xf32>
    tpu.vector_store %arg7[%c0_48, %c0_49], %40 {strides = array<i32>} : memref<288x128xf32, #tpu.memory_space<vmem>>, vector<288x128xf32>,
    %c0_50 = arith.constant 0 : index
    %c20 = arith.constant 20 : index
    %c0_51 = arith.constant 0 : index
    %42 = vector.load %arg2[%c0_50, %c20, %c0_51] : memref<1x328x8xbf16, #tpu.memory_space<vmem>>, vector<1x288x8xbf16>
    %43 = vector.shape_cast %42 : vector<1x288x8xbf16> to vector<288x8xbf16>
    %c0_52 = arith.constant 0 : index
    %c0_53 = arith.constant 0 : index
    %44 = vector.load %arg7[%c0_52, %c0_53] : memref<288x128xf32, #tpu.memory_space<vmem>>, vector<288x128xf32>
    %c5 = arith.constant 5 : index
    %c0_54 = arith.constant 0 : index
    %c0_55 = arith.constant 0 : index
    %45 = vector.load %arg3[%c5, %c0_54, %c0_55] : memref<9x8x128xbf16, #tpu.memory_space<vmem>>, vector<1x8x128xbf16>
    %46 = vector.shape_cast %45 : vector<1x8x128xbf16> to vector<8x128xbf16>
    %cst_56 = arith.constant dense<0.000000e+00> : vector<288x128xf32>
    %47 = tpu.matmul %43, %46, %cst_56 {dimension_numbers = #tpu.dot_dimension_numbers<[1], [0], [0], [1], [0, 0, 1, 1], [], []>} : vector<288x8xbf16>, vector<8x128xbf16>, vector<288x128xf32> -> vector<288x128xf32>
    %48 = arith.addf %44, %47 : vector<288x128xf32>
    %c0_57 = arith.constant 0 : index
    %c0_58 = arith.constant 0 : index
    %49 = vector.load %arg7[%c0_57, %c0_58] : memref<288x128xf32, #tpu.memory_space<vmem>>, vector<288x128xf32>
    tpu.vector_store %arg7[%c0_57, %c0_58], %48 {strides = array<i32>} : memref<288x128xf32, #tpu.memory_space<vmem>>, vector<288x128xf32>,
    %c0_59 = arith.constant 0 : index
    %c36 = arith.constant 36 : index
    %c0_60 = arith.constant 0 : index
    %50 = vector.load %arg2[%c0_59, %c36, %c0_60] : memref<1x328x8xbf16, #tpu.memory_space<vmem>>, vector<1x288x8xbf16>
    %51 = vector.shape_cast %50 : vector<1x288x8xbf16> to vector<288x8xbf16>
    %c0_61 = arith.constant 0 : index
    %c0_62 = arith.constant 0 : index
    %52 = vector.load %arg7[%c0_61, %c0_62] : memref<288x128xf32, #tpu.memory_space<vmem>>, vector<288x128xf32>
    %c6 = arith.constant 6 : index
    %c0_63 = arith.constant 0 : index
    %c0_64 = arith.constant 0 : index
    %53 = vector.load %arg3[%c6, %c0_63, %c0_64] : memref<9x8x128xbf16, #tpu.memory_space<vmem>>, vector<1x8x128xbf16>
    %54 = vector.shape_cast %53 : vector<1x8x128xbf16> to vector<8x128xbf16>
    %cst_65 = arith.constant dense<0.000000e+00> : vector<288x128xf32>
    %55 = tpu.matmul %51, %54, %cst_65 {dimension_numbers = #tpu.dot_dimension_numbers<[1], [0], [0], [1], [0, 0, 1, 1], [], []>} : vector<288x8xbf16>, vector<8x128xbf16>, vector<288x128xf32> -> vector<288x128xf32>
    %56 = arith.addf %52, %55 : vector<288x128xf32>
    %c0_66 = arith.constant 0 : index
    %c0_67 = arith.constant 0 : index
    %57 = vector.load %arg7[%c0_66, %c0_67] : memref<288x128xf32, #tpu.memory_space<vmem>>, vector<288x128xf32>
    tpu.vector_store %arg7[%c0_66, %c0_67], %56 {strides = array<i32>} : memref<288x128xf32, #tpu.memory_space<vmem>>, vector<288x128xf32>,
    %c0_68 = arith.constant 0 : index
    %c37 = arith.constant 37 : index
    %c0_69 = arith.constant 0 : index
    %58 = vector.load %arg2[%c0_68, %c37, %c0_69] : memref<1x328x8xbf16, #tpu.memory_space<vmem>>, vector<1x288x8xbf16>
    %59 = vector.shape_cast %58 : vector<1x288x8xbf16> to vector<288x8xbf16>
    %c0_70 = arith.constant 0 : index
    %c0_71 = arith.constant 0 : index
    %60 = vector.load %arg7[%c0_70, %c0_71] : memref<288x128xf32, #tpu.memory_space<vmem>>, vector<288x128xf32>
    %c7 = arith.constant 7 : index
    %c0_72 = arith.constant 0 : index
    %c0_73 = arith.constant 0 : index
    %61 = vector.load %arg3[%c7, %c0_72, %c0_73] : memref<9x8x128xbf16, #tpu.memory_space<vmem>>, vector<1x8x128xbf16>
    %62 = vector.shape_cast %61 : vector<1x8x128xbf16> to vector<8x128xbf16>
    %cst_74 = arith.constant dense<0.000000e+00> : vector<288x128xf32>
    %63 = tpu.matmul %59, %62, %cst_74 {dimension_numbers = #tpu.dot_dimension_numbers<[1], [0], [0], [1], [0, 0, 1, 1], [], []>} : vector<288x8xbf16>, vector<8x128xbf16>, vector<288x128xf32> -> vector<288x128xf32>
    %64 = arith.addf %60, %63 : vector<288x128xf32>
    %c0_75 = arith.constant 0 : index
    %c0_76 = arith.constant 0 : index
    %65 = vector.load %arg7[%c0_75, %c0_76] : memref<288x128xf32, #tpu.memory_space<vmem>>, vector<288x128xf32>
    tpu.vector_store %arg7[%c0_75, %c0_76], %64 {strides = array<i32>} : memref<288x128xf32, #tpu.memory_space<vmem>>, vector<288x128xf32>,
    %c0_77 = arith.constant 0 : index
    %c38 = arith.constant 38 : index
    %c0_78 = arith.constant 0 : index
    %66 = vector.load %arg2[%c0_77, %c38, %c0_78] : memref<1x328x8xbf16, #tpu.memory_space<vmem>>, vector<1x288x8xbf16>
    %67 = vector.shape_cast %66 : vector<1x288x8xbf16> to vector<288x8xbf16>
    %c0_79 = arith.constant 0 : index
    %c0_80 = arith.constant 0 : index
    %68 = vector.load %arg7[%c0_79, %c0_80] : memref<288x128xf32, #tpu.memory_space<vmem>>, vector<288x128xf32>
    %c8 = arith.constant 8 : index
    %c0_81 = arith.constant 0 : index
    %c0_82 = arith.constant 0 : index
    %69 = vector.load %arg3[%c8, %c0_81, %c0_82] : memref<9x8x128xbf16, #tpu.memory_space<vmem>>, vector<1x8x128xbf16>
    %70 = vector.shape_cast %69 : vector<1x8x128xbf16> to vector<8x128xbf16>
    %cst_83 = arith.constant dense<0.000000e+00> : vector<288x128xf32>
    %71 = tpu.matmul %67, %70, %cst_83 {dimension_numbers = #tpu.dot_dimension_numbers<[1], [0], [0], [1], [0, 0, 1, 1], [], []>} : vector<288x8xbf16>, vector<8x128xbf16>, vector<288x128xf32> -> vector<288x128xf32>
    %72 = arith.addf %68, %71 : vector<288x128xf32>
    %c0_84 = arith.constant 0 : index
    %c0_85 = arith.constant 0 : index
    %73 = vector.load %arg7[%c0_84, %c0_85] : memref<288x128xf32, #tpu.memory_space<vmem>>, vector<288x128xf32>
    tpu.vector_store %arg7[%c0_84, %c0_85], %72 {strides = array<i32>} : memref<288x128xf32, #tpu.memory_space<vmem>>, vector<288x128xf32>,
    %c0_86 = arith.constant 0 : index
    %c0_87 = arith.constant 0 : index
    %74 = vector.load %arg7[%c0_86, %c0_87] : memref<288x128xf32, #tpu.memory_space<vmem>>, vector<288x128xf32>
    %c0_88 = arith.constant 0 : index
    %c0_89 = arith.constant 0 : index
    %75 = vector.load %arg4[%c0_88, %c0_89] : memref<1x128xf32, #tpu.memory_space<vmem>>, vector<1x128xf32>
    %76 = vector.broadcast %75 : vector<1x128xf32> to vector<288x128xf32>
    %77 = arith.mulf %74, %76 : vector<288x128xf32>
    %c0_90 = arith.constant 0 : index
    %c0_91 = arith.constant 0 : index
    %78 = vector.load %arg5[%c0_90, %c0_91] : memref<1x128xf32, #tpu.memory_space<vmem>>, vector<1x128xf32>
    %79 = vector.broadcast %78 : vector<1x128xf32> to vector<288x128xf32>
    %80 = arith.addf %77, %79 : vector<288x128xf32>
    %cst_92 = arith.constant 0.000000e+00 : f32
    %81 = vector.broadcast %cst_92 : f32 to vector<288x128xf32>
    %82 = arith.maximumf %80, %81 : vector<288x128xf32>
    %c0_93 = arith.constant 0 : index
    %c0_94 = arith.constant 0 : index
    %c0_95 = arith.constant 0 : index
    %83 = vector.load %arg6[%c0_93, %c0_94, %c0_95] : memref<1x288x128xf32, #tpu.memory_space<vmem>>, vector<1x288x128xf32>
    %84 = vector.shape_cast %83 : vector<1x288x128xf32> to vector<288x128xf32>
    %85 = vector.shape_cast %82 : vector<288x128xf32> to vector<1x288x128xf32>
    tpu.vector_store %arg6[%c0_93, %c0_94, %c0_95], %85 {strides = array<i32>} : memref<1x288x128xf32, #tpu.memory_space<vmem>>, vector<1x288x128xf32>,
    return
  }
  func.func @transform_0(%arg0: i32, %arg1: i32) -> (i32, i32, i32) {
    %c0_i32 = arith.constant 0 : i32
    %c0_i32_0 = arith.constant 0 : i32
    %c0_i32_1 = arith.constant 0 : i32
    return %arg0, %c0_i32, %c0_i32_0 : i32, i32, i32
  }
  func.func @transform_1(%arg0: i32, %arg1: i32) -> (i32, i32, i32) {
    %c0_i32 = arith.constant 0 : i32
    %c0_i32_0 = arith.constant 0 : i32
    %c0_i32_1 = arith.constant 0 : i32
    return %c0_i32, %c0_i32_0, %arg1 : i32, i32, i32
  }
  func.func @transform_2(%arg0: i32, %arg1: i32) -> (i32, i32) {
    %c0_i32 = arith.constant 0 : i32
    %c0_i32_0 = arith.constant 0 : i32
    return %c0_i32, %arg1 : i32, i32
  }
  func.func @transform_3(%arg0: i32, %arg1: i32) -> (i32, i32) {
    %c0_i32 = arith.constant 0 : i32
    %c0_i32_0 = arith.constant 0 : i32
    return %c0_i32, %arg1 : i32, i32
  }
  func.func @transform_4(%arg0: i32, %arg1: i32) -> (i32, i32, i32) {
    %c0_i32 = arith.constant 0 : i32
    %c0_i32_0 = arith.constant 0 : i32
    return %arg0, %c0_i32, %arg1 : i32, i32, i32
  }
}

</mosaic_0001>

<bundles_post_ra>
// kernel: conv_block_forward.1
= control target key start
LH: loop header
LB: loop body
LE: loop exit
PB: predicated region body
PF: predicated region fallthrough
CT: control target
= control target key end

     0   :  { %s6966_s15 = smov 0   ;;  %s6968_s16 = smov 0   ;;  %s7759_s0 = inlined_call_operand.vmem [shape: bf16[2,328,8], index: 0, kind: input, shape index: {}]   ;;  %s7760_s1 = inlined_call_operand.vmem [shape: bf16[9,8,128], index: 1, kind: input, shape index: {}]   ;;  %s7761_s2 = inlined_call_operand.vmem [shape: f32[1,128], index: 2, kind: input, shape index: {}]   ;;  %s7762_s3 = inlined_call_operand.vmem [shape: f32[1,128], index: 3, kind: input, shape index: {}]   ;;  %s7763_s4 = inlined_call_operand.vmem [shape: f32[2,288,128], index: 4, kind: output, shape index: {}]  }
   0x1   :  { %s6970_s17 = smov 0  }
   0x2 LB: > { %s26_s18 = sadd.s32 1, %s6935_s16  ;;  %p5560_p0 = scmp.ge.s32.totalorder %s6939_s17, 1  ;;  %s6939_s17 = sphi %s6970_s17, %s14_s17   ;;  %s6935_s16 = sphi %s6968_s16, %s7765_s16   ;;  %s6931_s15 = sphi %s6966_s15, %s7764_s15  }
   0x3   : > { %p28_p1 = scmp.ge.s32.totalorder %s26_s18, 2  ;;  %p201_p2 = scmp.lt.s32.totalorder %s6939_s17, 3 }
   0x5   : > { %s7767_s18 = smov (%p28_p1, %s26_s18), 0  ;;  %p202_p3 = pnand %p5560_p0, %p201_p2 }
   0x6   : > { %v372_v0 = vld [vmem:[%s7760_s1] sm:$0xf] (!%p202_p3)  ;;  %vm518_vm0 = vcmask (!%p202_p3), 1043456   ;;  %p240_p4 = scmp.lt.s32.totalorder (!%p202_p3), %s6931_s15, 1  ;;  %v5713_v2 = vld [vmem:[%s7760_s1 + $0x10] sm:$0xf] (!%p202_p3) }
   0x7   : > { %205 = sbr.rel (%p202_p3) target bundleno = 572 (0x23c), region = 36  ;;  %6710 = vmatprep.subr.msk.bf16.mxu1 (!%p202_p3), %vm518_vm0, %v372_v0  ;;  %v520_v1 = vsel (!%p202_p3), %vm518_vm0, %v372_v0, 0  ;;  %6714 = vmatprep.subr.msk.bf16.mxu0 (!%p202_p3), %vm518_vm0, %v5713_v2  ;;  %v6996_v3 = vsel (!%p202_p3), %vm518_vm0, %v5713_v2, 0  ;;  %v5751_v4 = vld [vmem:[%s7760_s1 + $0x14] sm:$0xf] (!%p202_p3)  ;;  %vm463_vm1 = vcmask (!%p202_p3), 64512  }
   0x8   : > { %6079 = vmatpush3.bf16.msra.mxu1 (!%p202_p3), %v520_v1  ;;  %v5599_v5 = vld [vmem:[%s7760_s1 + $0x4] sm:$0xf] (!%p202_p3)  ;;  %6231 = vmatpush3.bf16.msra.mxu0 (!%p202_p3), %v6996_v3  ;;  %vm2585_vm2 = vsmask.f32 (!%p202_p3), 6400  ;;  %v7017_v7 = vld [vmem:[%s7760_s1 + $0x8] sm:$0xf] (!%p202_p3) }
   0x9   : > { %6711 = vmatprep.subr.msk.bf16.mxu1 (!%p202_p3), %vm518_vm0, %v5599_v5  ;;  %6716 = vmatprep.subr.msk.bf16.mxu0 (!%p202_p3), %vm518_vm0, %v5751_v4  ;;  %v1143_v9 = vsel (!%p202_p3), %vm518_vm0, %v5599_v5, 0  ;;  %v3323_v18 = vsel (!%p202_p3), %vm518_vm0, %v5751_v4, 0  ;;  %v7042_v40 = vld [vmem:[%s7760_s1 + $0x18] sm:$0xf] (!%p202_p3)  ;;  %vm3230_vm3 = vcmask (!%p202_p3), 1045504   ;;  %vm1562_vm5 = vcmask (!%p202_p3), 1046528  }
   0xa   : > { %vm939_vm4 = vsmask.f32 (!%p202_p3), 7424  ;;  %vm4253_vm6 = vsmask.f32 (!%p202_p3), 5376  ;;  %vm4898_vm7 = vcmask (!%p202_p3), 1044480  }
   0xe   : > { %s7769_s15 = smov (!%p240_p4, %s6931_s15), 1 }
   0xf   : > { %s6720_s27 = smul.u32 164, %s7769_s15 }
  0x10   : > { %s6721_s23 = smul.u32 288, %s7769_s15 }
  0x11   : > { %s7011_s30 = scalar_lea.vmem %s7759_s0, %s6720_s27 }
  0x12   : > { %v6746_v6 = vld [vmem:[%s7011_s30] sm:$0xff]   ;;  %v6747_v8 = vld [vmem:[%s7011_s30 + $0x8] sm:$0xff]   ;;  %v6749_v11 = vld [vmem:[%s7011_s30 + $0x10] sm:$0xff]   ;;  %s7585_s27 = scalar_lea.vmem %s7763_s4, %s6721_s23 }
  0x13   : > { %6080 = vmatprep.mubr.msk.bf16.mxu1 %vm463_vm1, %v6746_v6  ;;  %v6748_v10 = vld [vmem:[%s7011_s30 + $0x8] sm:$0xfe]   ;;  %v6750_v12 = vld [vmem:[%s7011_s30 + $0x10] sm:$0xff]   ;;  %v2595_v15 = vshrl.u32 %v6749_v11, 16  ;;  %v2598_v16 = vshll.u32 %v6749_v11, 16  ;;  %v6751_v17 = vld [vmem:[%s7011_s30 + $0x18] sm:$0xff]  }
  0x14   : > { %6081 = vmatmul.mubr.msk.bf16.vlgmr.msra.gmra.mrb[0].mxu1 %vm463_vm1, %v6747_v8  ;;  %v2587_v13 = vshrl.u32 %v6748_v10, 16  ;;  %v2590_v14 = vshll.u32 %v6748_v10, 16  ;;  %v2604_v23 = vshrl.u32 %v6751_v17, 16  ;;  %v2607_v24 = vshll.u32 %v6751_v17, 16  ;;  %v6752_v25 = vld [vmem:[%s7011_s30 + $0x18] sm:$0xff]   ;;  %v6753_v26 = vld [vmem:[%s7011_s30 + $0x20] sm:$0xff]  }
  0x15   : > { %6117 = vmatpush3.bf16.msra.mxu1 %v1143_v9  ;;  %6084 = vmatprep.mubr.msk.bf16.mxu1 %vm463_vm1, %v6750_v12  ;;  %v2597_v21 = vrot.slane %v2595_v15, 1  ;;  %v2600_v22 = vrot.slane %v2598_v16, 2  ;;  %v2613_v31 = vshrl.u32 %v6753_v26, 16  ;;  %v2616_v32 = vshll.u32 %v6753_v26, 16  ;;  %v6754_v33 = vld [vmem:[%s7011_s30 + $0x20] sm:$0xff]   ;;  %v6755_v34 = vld [vmem:[%s7011_s30 + $0x28] sm:$0xff]  }
  0x16   : > { %6712 = vmatprep.subr.msk.bf16.mxu1 %vm518_vm0, %v7017_v7  ;;  %v2589_v19 = vrot.slane %v2587_v13, 1  ;;  %v2592_v20 = vrot.slane %v2590_v14, 2  ;;  %v2606_v29 = vrot.slane %v2604_v23, 1  ;;  %v2609_v30 = vrot.slane %v2607_v24, 2  ;;  %v6756_v42 = vld [vmem:[%s7011_s30 + $0x28] sm:$0xff]   ;;  %v6757_v43 = vld [vmem:[%s7011_s30 + $0x30] sm:$0xff]  }
  0x17   : > { %v2601_v28 = vor.u32 %v2600_v22, %v2597_v21  ;;  %v2615_v37 = vrot.slane %v2613_v31, 1  ;;  %v2618_v38 = vrot.slane %v2616_v32, 2  ;;  %v2622_v39 = vshrl.u32 %v6755_v34, 16  ;;  %v6758_v47 = vld [vmem:[%s7011_s30 + $0x30] sm:$0xff]   ;;  %v6759_v51 = vld [vmem:[%s7011_s30 + $0x38] sm:$0xff]   ;;  %v6761_v58 = vld [vmem:[%s7011_s30 + $0x40] sm:$0xff]  }
  0x18   : > { %v2593_v27 = vor.u32 %v2592_v20, %v2589_v19  ;;  %v2610_v36 = vor.u32 %v2609_v30, %v2606_v29  ;;  %v2625_v41 = vshll.u32 %v6755_v34, 16  ;;  %v2631_v49 = vshrl.u32 %v6757_v43, 16  ;;  %v6763_v1 = vld [vmem:[%s7011_s30 + $0x48] sm:$0xff]   ;;  %v6760_v4 = vld [vmem:[%s7011_s30 + $0x38] sm:$0xff]   ;;  %v6765_v8 = vld [vmem:[%s7011_s30 + $0x50] sm:$0xff]  }
  0x19   : > { %v2619_v45 = vor.u32 %v2618_v38, %v2615_v37  ;;  %v2624_v46 = vrot.slane %v2622_v39, 1  ;;  %v2634_v50 = vshll.u32 %v6757_v43, 16  ;;  %v2640_v56 = vshrl.u32 %v6759_v51, 16  ;;  %v6762_v12 = vld [vmem:[%s7011_s30 + $0x40] sm:$0xff]   ;;  %v6764_v23 = vld [vmem:[%s7011_s30 + $0x48] sm:$0xff]   ;;  %v6766_v24 = vld [vmem:[%s7011_s30 + $0x50] sm:$0xff]  }
  0x1a   : > { %v2602_v35 = vsel %vm2585_vm2, %v2593_v27, %v2601_v28  ;;  %v2611_v44 = vsel %vm2585_vm2, %v2601_v28, %v2610_v36  ;;  %v2627_v48 = vrot.slane %v2625_v41, 2  ;;  %v2633_v54 = vrot.slane %v2631_v49, 1  ;;  %v6770_v29 = vld [vmem:[%s7011_s30 + $0x10] sm:$0xff]   ;;  %v6769_v34 = vld [vmem:[%s7011_s30 + $0x8] sm:$0xfc]   ;;  %v6771_v37 = vld [vmem:[%s7011_s30 + $0x60] sm:$0xff]  }
  0x1b   : > { %6232 = vmatprep.mubr.msk.bf16.mxu0 %vm463_vm1, %v2602_v35  ;;  %v2620_v52 = vsel %vm2585_vm2, %v2610_v36, %v2619_v45  ;;  %v2636_v55 = vrot.slane %v2634_v50, 2  ;;  %v2643_v57 = vshll.u32 %v6759_v51, 16  ;;  %v2642_v60 = vrot.slane %v2640_v56, 1  ;;  %v6768_v35 = vld [vmem:[%s7011_s30 + $0x58] sm:$0xff]   ;;  %v6783_v49 = vld [vmem:[%s7011_s30] sm:$0xff]   ;;  %v6776_v50 = vld [vmem:[%s7011_s30 + $0x28] sm:$0xff]  }
  0x1c   : > { %6085 = vmatmul.mubr.msk.bf16.gmra.mrb[4].mxu1 %vm463_vm1, %v6752_v25  ;;  %6233 = vmatmul.mubr.msk.bf16.vlgmr.msra.gmra.mrb[0].mxu0 %vm463_vm1, %v2611_v44  ;;  %v2628_v53 = vor.u32 %v2627_v48, %v2624_v46  ;;  %v2649_v63 = vshrl.u32 %v6761_v58, 16  ;;  %v2652_v0 = vshll.u32 %v6761_v58, 16  ;;  %v2658_v9 = vshrl.u32 %v6763_v1, 16  ;;  %v6774_v44 = vld [vmem:[%s7011_s30 + $0x20] sm:$0xff]  }
  0x1d   : > { %6088 = vmatprep.mubr.msk.bf16.mxu1 %vm463_vm1, %v6754_v33  ;;  %6269 = vmatpush3.bf16.msra.mxu0 %v3323_v18  ;;  %v2637_v59 = vor.u32 %v2636_v55, %v2633_v54  ;;  %v2645_v62 = vrot.slane %v2643_v57, 2  ;;  %v2661_v10 = vshll.u32 %v6763_v1, 16  ;;  %v2667_v14 = vshrl.u32 %v6765_v8, 16  ;;  %v6767_v18 = vld [vmem:[%s7011_s30 + $0x58] sm:$0xff]   ;;  %v6778_v55 = vld [vmem:[%s7011_s30 + $0x30] sm:$0xff]  }
  0x1e   : > { %6236 = vmatprep.mubr.msk.bf16.mxu0 %vm463_vm1, %v2620_v52  ;;  %6717 = vmatprep.subr.msk.bf16.mxu0 %vm518_vm0, %v7042_v40  ;;  %v2629_v61 = vsel %vm2585_vm2, %v2619_v45, %v2628_v53  ;;  %v2651_v5 = vrot.slane %v2649_v63, 1  ;;  %v2654_v6 = vrot.slane %v2652_v0, 2  ;;  %v2670_v15 = vshll.u32 %v6765_v8, 16  ;;  %v6773_v45 = vld [vmem:[%s7011_s30 + $0x68] sm:$0xff]   ;;  %v7110_v57 = vld [vmem:[%s7760_s1 + $0x1c] sm:$0xf] }
  0x1f   : > { %v2638_v2 = vsel %vm2585_vm2, %v2628_v53, %v2637_v59  ;;  %v2646_v11 = vor.u32 %v2645_v62, %v2642_v60  ;;  %v2660_v16 = vrot.slane %v2658_v9, 1  ;;  %v2663_v17 = vrot.slane %v2661_v10, 2  ;;  %v6784_v53 = vld [vmem:[%s7011_s30 + $0x8] sm:$0xff]   ;;  %v6780_v0 = vld [vmem:[%s7011_s30 + $0x38] sm:$0xff]   ;;  %v6786_v1 = vld [vmem:[%s7011_s30 + $0x10] sm:$0xff]  }
  0x20   : > { %v2655_v13 = vor.u32 %v2654_v6, %v2651_v5  ;;  %v2669_v21 = vrot.slane %v2667_v14, 1  ;;  %v2672_v22 = vrot.slane %v2670_v15, 2  ;;  %v2676_v26 = vshrl.u32 %v6767_v18, 16  ;;  %v6788_v6 = vld [vmem:[%s7011_s30 + $0x18] sm:$0xff]   ;;  %v6781_v10 = vld [vmem:[%s7011_s30 + $0x88] sm:$0xff]  }
  0x21   : > { %v2647_v19 = vsel %vm2585_vm2, %v2637_v59, %v2646_v11  ;;  %v2664_v25 = vor.u32 %v2663_v17, %v2660_v16  ;;  %v2679_v27 = vshll.u32 %v6767_v18, 16  ;;  %v3231_v38 = vrot.slane %v6769_v34, 2  ;;  %v6777_v59 = vld [vmem:[%s7011_s30 + $0x78] sm:$0xff]   ;;  %v6785_v18 = vld [vmem:[%s7011_s30 + $0x48] sm:$0xff]  }
  0x22   : > { %v2656_v20 = vsel %vm2585_vm2, %v2646_v11, %v2655_v13  ;;  %v2673_v28 = vor.u32 %v2672_v22, %v2669_v21  ;;  %v2678_v31 = vrot.slane %v2676_v26, 1  ;;  %v3232_v39 = vrot.slane %v6770_v29, 2 }
  0x23   : > { %v2665_v30 = vsel %vm2585_vm2, %v2655_v13, %v2664_v25  ;;  %v2681_v32 = vrot.slane %v2679_v27, 2  ;;  %v3236_v48 = vrot.slane %v6774_v44, 2  ;;  %v3834_v52 = vsel %vm518_vm0, %v7042_v40, 0  ;;  %v6779_v40 = vld [vmem:[%s7011_s30 + $0x80] sm:$0xff]   ;;  %v6792_v27 = vld [vmem:[%s7011_s30 + $0x28] sm:$0xff]   ;;  %v6796_v44 = vld [vmem:[%s7011_s30 + $0x38] sm:$0xff]  }
  0x24   : > { %6089 = vmatmul.mubr.msk.bf16.gmra.mrb[8].mxu1 %vm463_vm1, %v6756_v42  ;;  %6237 = vmatmul.mubr.msk.bf16.gmra.mrb[4].mxu0 %vm463_vm1, %v2629_v61  ;;  %v2674_v33 = vsel %vm2585_vm2, %v2664_v25, %v2673_v28  ;;  %v6772_v42 = vld [vmem:[%s7011_s30 + $0x18] sm:$0xff]   ;;  %v3233_v43 = vsel %vm3230_vm3, %v3231_v38, %v3232_v39  ;;  %v943_v56 = vshll.u32 %v6783_v49, 16  ;;  %v3238_v58 = vrot.slane %v6776_v50, 2 }
  0x25   : > { %6092 = vmatprep.mubr.msk.bf16.mxu1 %vm463_vm1, %v6758_v47  ;;  %6240 = vmatprep.mubr.msk.bf16.mxu0 %vm463_vm1, %v2638_v2  ;;  %v7083_v36 = vor.u32 %v2681_v32, %v2678_v31  ;;  %v3234_v46 = vrot.slane %v6772_v42, 2  ;;  %v6775_v47 = vld [vmem:[%s7011_s30 + $0x70] sm:$0xff]   ;;  %v948_v60 = vshll.u32 %v6784_v53, 16  ;;  %v3240_v61 = vrot.slane %v6778_v55, 2  ;;  %v6789_v38 = vld [vmem:[%s7011_s30 + $0x58] sm:$0xff]  }
  0x26   : > { %v941_v62 = vshrl.u32 %v6783_v49, 16  ;;  %v945_v63 = vrot.slane %v943_v56, 1  ;;  %v3239_v2 = vsel %vm3230_vm3, %v3236_v48, %v3238_v58  ;;  %v956_v11 = vshll.u32 %v6786_v1, 16  ;;  %v6793_v56 = vld [vmem:[%s7011_s30 + $0x68] sm:$0xff]  }
  0x27   : > { %v2683_v41 = vsel %vm2585_vm2, %v2673_v28, %v7083_v36  ;;  %v3235_v51 = vsel %vm3230_vm3, %v3232_v39, %v3234_v46  ;;  %v3237_v54 = vsel %vm3230_vm3, %v3234_v46, %v3236_v48  ;;  %v950_v5 = vrot.slane %v948_v60, 1 }
  0x28   : > { %v3241_v8 = vsel %vm3230_vm3, %v3238_v58, %v3240_v61  ;;  %v946_v9 = vor.u32 %v945_v63, %v941_v62  ;;  %v952_v13 = vshrl.u32 %v6784_v53, 16  ;;  %v960_v16 = vshrl.u32 %v6786_v1, 16  ;;  %v6800_v1 = vld [vmem:[%s7011_s30 + $0x48] sm:$0xff]  }
  0x29   : > { %v964_v17 = vshll.u32 %v6788_v6, 16  ;;  %v1655_v28 = vsel %vm518_vm0, %v7017_v7, 0  ;;  %v3246_v29 = vrot.slane %v6785_v18, 2  ;;  %v6791_v7 = vld [vmem:[%s7011_s30 + $0x60] sm:$0xff]   ;;  %v3250_v48 = vrot.slane %v6789_v38, 2 }
  0x2a   : > { %v951_v15 = vsel %vm939_vm4, %v946_v9, %v950_v5  ;;  %v954_v22 = vor.u32 %v952_v13, %v950_v5  ;;  %v3252_v49 = vrot.slane %v6791_v7, 2 }
  0x2b   : > { %v966_v26 = vrot.slane %v964_v17, 1  ;;  %v6799_v17 = vld [vmem:[%s7011_s30 + $0x80] sm:$0xff]  }
  0x2c   : > { %6093 = vmatmul.mubr.msk.bf16.gmra.mrb[12].mxu1 %vm463_vm1, %v6760_v4  ;;  %6241 = vmatmul.mubr.msk.bf16.gmra.mrb[8].mxu0 %vm463_vm1, %v2647_v19  ;;  %v6782_v4 = vld [vmem:[%s7011_s30 + $0x40] sm:$0xff]   ;;  %v958_v19 = vrot.slane %v956_v11, 1  ;;  %v3253_v62 = vsel %vm3230_vm3, %v3250_v48, %v3252_v49  ;;  %v1012_v11 = vshll.u32 %v6800_v1, 16 }
  0x2d   : > { %6096 = vmatprep.mubr.msk.bf16.mxu1 %vm463_vm1, %v6762_v12  ;;  %6244 = vmatprep.mubr.msk.bf16.mxu0 %vm463_vm1, %v2656_v20  ;;  %v3242_v12 = vrot.slane %v6780_v0, 2  ;;  %v3244_v14 = vrot.slane %v6782_v4, 2  ;;  %v6790_v20 = vld [vmem:[%s7011_s30 + $0x20] sm:$0xff]  }
  0x2e   : > { %v962_v25 = vor.u32 %v960_v16, %v958_v19  ;;  %v959_v31 = vsel %vm939_vm4, %v954_v22, %v958_v19  ;;  %v7179_v22 = vld [vmem:[%s7760_s1 + $0xc] sm:$0xf] }
  0x2f   : > { %v3243_v21 = vsel %vm3230_vm3, %v3240_v61, %v3242_v12  ;;  %v3247_v42 = vsel %vm3230_vm3, %v3244_v14, %v3246_v29  ;;  %v6795_v61 = vld [vmem:[%s7011_s30 + $0x70] sm:$0xff]  }
  0x30   : > { %v967_v34 = vsel %vm939_vm4, %v962_v25, %v966_v26 }
  0x34   : > { %6097 = vmatmul.mubr.msk.bf16.gmra.mrb[16].mxu1 %vm463_vm1, %v6764_v23  ;;  %6245 = vmatmul.mubr.msk.bf16.gmra.mrb[12].mxu0 %vm463_vm1, %v2665_v30  ;;  %v6787_v23 = vld [vmem:[%s7011_s30 + $0x50] sm:$0xff]   ;;  %v972_v30 = vshll.u32 %v6790_v20, 16 }
  0x35   : > { %6100 = vmatprep.mubr.msk.bf16.mxu1 %vm463_vm1, %v6766_v24  ;;  %6248 = vmatprep.mubr.msk.bf16.mxu0 %vm463_vm1, %v2674_v33  ;;  %v3245_v24 = vsel %vm3230_vm3, %v3242_v12, %v3244_v14  ;;  %v3248_v32 = vrot.slane %v6787_v23, 2  ;;  %v968_v33 = vshrl.u32 %v6788_v6, 16  ;;  %v3256_v6 = vrot.slane %v6795_v61, 2  ;;  %v6797_v12 = vld [vmem:[%s7011_s30 + $0x78] sm:$0xff]   ;;  %v6802_v14 = vld [vmem:[%s7011_s30 + $0x50] sm:$0xff]  }
  0x36   : > { %v974_v39 = vrot.slane %v972_v30, 1  ;;  %v1020_v23 = vshll.u32 %v6802_v14, 16 }
  0x3c   : > { %6101 = vmatmul.mubr.msk.bf16.gmra.mrb[20].mxu1 %vm463_vm1, %v6768_v35  ;;  %6249 = vmatmul.mubr.msk.bf16.gmra.mrb[16].mxu0 %vm463_vm1, %v2683_v41  ;;  %v976_v35 = vshrl.u32 %v6790_v20, 16  ;;  %v6794_v41 = vld [vmem:[%s7011_s30 + $0x30] sm:$0xff]   ;;  %v1014_v20 = vrot.slane %v1012_v11, 1  ;;  %v6810_v11 = vld [vmem:[%s7011_s30 + $0x20] sm:$0xff]  }
  0x3d   : > { %6104 = vmatprep.mubr.msk.bf16.mxu1 %vm463_vm1, %v6771_v37  ;;  %6270 = vmatprep.mubr.msk.bf16.mxu0 %vm463_vm1, %v3233_v43  ;;  %v980_v37 = vshll.u32 %v6792_v27, 16  ;;  %v970_v43 = vor.u32 %v968_v33, %v966_v26  ;;  %v988_v50 = vshll.u32 %v6794_v41, 16  ;;  %v992_v53 = vshrl.u32 %v6794_v41, 16  ;;  %v6806_v33 = vld [vmem:[%s7011_s30 + $0x60] sm:$0xff]   ;;  %v6809_v41 = vld [vmem:[%s7011_s30 + $0x68] sm:$0xff]  }
  0x3e   : > { %v978_v46 = vor.u32 %v976_v35, %v974_v39  ;;  %v3260_v26 = vrot.slane %v6799_v17, 2  ;;  %v6817_v17 = vld [vmem:[%s7011_s30 + $0x88] sm:$0xff]  }
  0x3f   : > { %v990_v58 = vrot.slane %v988_v50, 1  ;;  %v1044_v50 = vshll.u32 %v6809_v41, 16 }
  0x41   : > { %v994_v63 = vor.u32 %v992_v53, %v990_v58 }
  0x44   : > { %6105 = vmatmul.mubr.msk.bf16.gmra.mrb[24].mxu1 %vm463_vm1, %v6773_v45  ;;  %6271 = vmatmul.mubr.msk.bf16.vlgmr.msra.gmra.mrb[0].mxu0 %vm463_vm1, %v3235_v51  ;;  %v3249_v45 = vsel %vm3230_vm3, %v3246_v29, %v3248_v32  ;;  %v975_v51 = vsel %vm939_vm4, %v970_v43, %v974_v39  ;;  %v1024_v29 = vshrl.u32 %v6802_v14, 16  ;;  %v1036_v43 = vshll.u32 %v6806_v33, 16 }
  0x45   : > { %6108 = vmatprep.mubr.msk.bf16.mxu1 %vm463_vm1, %v6775_v47  ;;  %6307 = vmatpush3.bf16.msra.mxu0 %v3834_v52  ;;  %v982_v47 = vrot.slane %v980_v37, 1  ;;  %v984_v52 = vshrl.u32 %v6792_v27, 16  ;;  %v1016_v27 = vshrl.u32 %v6800_v1, 16  ;;  %v6803_v37 = vld [vmem:[%s7011_s30 + $0x90] sm:$0xff]   ;;  %v1048_v1 = vshrl.u32 %v6809_v41, 16 }
  0x46   : > { %6274 = vmatprep.mubr.msk.bf16.mxu0 %vm463_vm1, %v3237_v54  ;;  %6718 = vmatprep.subr.msk.bf16.mxu0 %vm518_vm0, %v7110_v57  ;;  %v996_v54 = vshll.u32 %v6796_v44, 16 }
  0x47   : > { %v983_v55 = vsel %vm939_vm4, %v978_v46, %v982_v47  ;;  %v986_v60 = vor.u32 %v984_v52, %v982_v47  ;;  %v1018_v35 = vor.u32 %v1016_v27, %v1014_v20  ;;  %v6811_v52 = vld [vmem:[%s7011_s30 + $0x70] sm:$0xff]  }
  0x48   : > { %v998_v0 = vrot.slane %v996_v54, 1  ;;  %v6814_v27 = vld [vmem:[%s7011_s30 + $0x30] sm:$0xff]  }
  0x49   : > { %v991_v5 = vsel %vm939_vm4, %v986_v60, %v990_v58  ;;  %v6807_v58 = vld [vmem:[%s7011_s30 + $0x10] sm:$0xfc]   ;;  %v6813_v60 = vld [vmem:[%s7011_s30 + $0x78] sm:$0xff]  }
  0x4a   : > { %v999_v9 = vsel %vm939_vm4, %v994_v63, %v998_v0 }
  0x4c   : > { %6109 = vmatmul.mubr.msk.bf16.gmra.mrb[28].mxu1 %vm463_vm1, %v6777_v59  ;;  %6275 = vmatmul.mubr.msk.bf16.gmra.mrb[4].mxu0 %vm463_vm1, %v3239_v2  ;;  %v6798_v59 = vld [vmem:[%s7011_s30 + $0x40] sm:$0xff]   ;;  %v3254_v2 = vrot.slane %v6793_v56, 2 }
  0x4d   : > { %6112 = vmatprep.mubr.msk.bf16.mxu1 %vm463_vm1, %v6779_v40  ;;  %6278 = vmatprep.mubr.msk.bf16.mxu0 %vm463_vm1, %v3241_v8  ;;  %v3251_v40 = vsel %vm3230_vm3, %v3248_v32, %v3250_v48  ;;  %v1004_v4 = vshll.u32 %v6798_v59, 16  ;;  %v1000_v8 = vshrl.u32 %v6796_v44, 16  ;;  %v1022_v32 = vrot.slane %v1020_v23, 1  ;;  %v6805_v48 = vld [vmem:[%s7011_s30 + $0x98] ss:$0 sps:$4 sm:$0x33]  }
  0x4e   : > { %v3257_v18 = vsel %vm3230_vm3, %v3254_v2, %v3256_v6  ;;  %v3266_v61 = vrot.slane %v6805_v48, 2  ;;  %v1064_v23 = vshrl.u32 %v6813_v60, 16 }
  0x4f   : > { %v1006_v13 = vrot.slane %v1004_v4, 1  ;;  %v1002_v16 = vor.u32 %v1000_v8, %v998_v0  ;;  %v1026_v39 = vor.u32 %v1024_v29, %v1022_v32  ;;  %v1023_v44 = vsel %vm939_vm4, %v1018_v35, %v1022_v32  ;;  %v6815_v8 = vld [vmem:[%s7011_s30 + $0x80] sm:$0xff]   ;;  %v6819_v29 = vld [vmem:[%s7011_s30 + $0x90] ss:$0 sps:$4 sm:$0x11]   ;;  %v6816_v32 = vld [vmem:[%s7011_s30 + $0x38] sm:$0xff]  }
  0x50   : > { %v3751_v41 = vrot.slane %v6816_v32, 2  ;;  %v6836_v32 = vld [vmem:[%s7011_s30 + $0x40] sm:$0xff]  }
  0x51   : > { %v1007_v25 = vsel %vm939_vm4, %v1002_v16, %v1006_v13 }
  0x54   : > { %6113 = vmatmul.mubr.msk.bf16.gmra.mrb[32].mxu1 %vm463_vm1, %v6781_v10  ;;  %6279 = vmatmul.mubr.msk.bf16.gmra.mrb[8].mxu0 %vm463_vm1, %v3243_v21  ;;  %v1008_v10 = vshrl.u32 %v6798_v59, 16  ;;  %v6804_v21 = vld [vmem:[%s7011_s30 + $0x58] sm:$0xff]  }
  0x55   : > { %6118 = vmatprep.mubr.msk.bf16.mxu1 %vm463_vm1, %v951_v15  ;;  %6282 = vmatprep.mubr.msk.bf16.mxu0 %vm463_vm1, %v3245_v24  ;;  %v3255_v15 = vsel %vm3230_vm3, %v3252_v49, %v3254_v2  ;;  %v3258_v24 = vrot.slane %v6797_v12, 2  ;;  %v1028_v30 = vshll.u32 %v6804_v21, 16  ;;  %v1032_v46 = vshrl.u32 %v6804_v21, 16 }
  0x56   : > { %v1010_v19 = vor.u32 %v1008_v10, %v1006_v13  ;;  %v1040_v49 = vshrl.u32 %v6806_v33, 16  ;;  %v3742_v2 = vrot.slane %v6807_v58, 2  ;;  %v6812_v13 = vld [vmem:[%s7011_s30 + $0x28] sm:$0xff]   ;;  %v4479_v33 = vsel %vm518_vm0, %v7110_v57, 0 }
  0x57   : > { %v3261_v38 = vsel %vm3230_vm3, %v3258_v24, %v3260_v26  ;;  %v1030_v7 = vrot.slane %v1028_v30, 1  ;;  %v3747_v21 = vrot.slane %v6812_v13, 2 }
  0x59   : > { %v1031_v47 = vsel %vm939_vm4, %v1026_v39, %v1030_v7  ;;  %v1034_v54 = vor.u32 %v1032_v46, %v1030_v7  ;;  %v1084_v39 = vshll.u32 %v6819_v29, 16  ;;  %v3749_v7 = vrot.slane %v6814_v27, 2  ;;  %v6818_v46 = vld [vmem:[%s7011_s30 + $0x40] sm:$0xff]  }
  0x5b   : > { %v3750_v48 = vsel %vm3230_vm3, %v3747_v21, %v3749_v7 }
  0x5c   : > { %6119 = vmatmul.mubr.msk.bf16.vlgmr.msra.gmra.mrb[0].mxu1 %vm463_vm1, %v959_v31  ;;  %6283 = vmatmul.mubr.msk.bf16.gmra.mrb[12].mxu0 %vm463_vm1, %v3247_v42  ;;  %v6801_v31 = vld [vmem:[%s7011_s30 + $0x88] sm:$0xff]  }
  0x5d   : > { %6122 = vmatprep.mubr.msk.bf16.mxu1 %vm463_vm1, %v967_v34  ;;  %6155 = vmatpush3.bf16.msra.mxu1 %v1655_v28  ;;  %v1015_v28 = vsel %vm939_vm4, %v1010_v19, %v1014_v20  ;;  %v3259_v34 = vsel %vm3230_vm3, %v3256_v6, %v3258_v24  ;;  %v3262_v42 = vrot.slane %v6801_v31, 2  ;;  %v1060_v6 = vshll.u32 %v6813_v60, 16  ;;  %v6823_v60 = vld [vmem:[%s7011_s30 + $0x50] sm:$0xff]  }
  0x5e   : > { %6286 = vmatprep.mubr.msk.bf16.mxu0 %vm463_vm1, %v3249_v45  ;;  %6713 = vmatprep.subr.msk.bf16.mxu1 %vm518_vm0, %v7179_v22  ;;  %v3264_v45 = vrot.slane %v6803_v37, 2  ;;  %v3745_v19 = vrot.slane %v6810_v11, 2 }
  0x5f   : > { %v3263_v53 = vsel %vm3230_vm3, %v3260_v26, %v3262_v42  ;;  %v1062_v16 = vrot.slane %v1060_v6, 1  ;;  %v1076_v26 = vshll.u32 %v6817_v17, 16  ;;  %v6828_v6 = vld [vmem:[%s7011_s30 + $0x20] sm:$0xff]  }
  0x60   : > { %v3265_v56 = vsel %vm3230_vm3, %v3262_v42, %v3264_v45  ;;  %v3267_v10 = vsel %vm3230_vm3, %v3264_v45, %v3266_v61  ;;  %v1080_v42 = vshrl.u32 %v6817_v17, 16  ;;  %v6821_v45 = vld [vmem:[%s7011_s30] sm:$0xfe]   ;;  %v1570_v13 = vrot.slane %v6828_v6, 1 }
  0x61   : > { %v1066_v31 = vor.u32 %v1064_v23, %v1062_v16  ;;  %v1078_v37 = vrot.slane %v1076_v26, 1  ;;  %v6834_v23 = vld [vmem:[%s7011_s30 + $0x38] sm:$0xff]   ;;  %v6848_v6 = vld [vmem:[%s7011_s30 + $0x20] sm:$0xff]  }
  0x62   : > { %v1576_v29 = vrot.slane %v6834_v23, 1 }
  0x64   : > { %6123 = vmatmul.mubr.msk.bf16.gmra.mrb[4].mxu1 %vm463_vm1, %v975_v51  ;;  %6287 = vmatmul.mubr.msk.bf16.gmra.mrb[16].mxu0 %vm463_vm1, %v3251_v40  ;;  %v1038_v51 = vrot.slane %v1036_v43, 1  ;;  %v1046_v40 = vrot.slane %v1044_v50, 1  ;;  %v6822_v43 = vld [vmem:[%s7011_s30 + $0x8] sm:$0xff]   ;;  %v3752_v50 = vsel %vm3230_vm3, %v3749_v7, %v3751_v41  ;;  %v1578_v7 = vrot.slane %v6836_v32, 1 }
  0x65   : > { %6126 = vmatprep.mubr.msk.bf16.mxu1 %vm463_vm1, %v983_v55  ;;  %6290 = vmatprep.mubr.msk.bf16.mxu0 %vm463_vm1, %v3253_v62  ;;  %v6808_v55 = vld [vmem:[%s7011_s30 + $0x18] sm:$0xff]   ;;  %v1052_v62 = vshll.u32 %v6811_v52, 16 }
  0x66   : > { %v1042_v59 = vor.u32 %v1040_v49, %v1038_v51  ;;  %v1039_v63 = vsel %vm939_vm4, %v1034_v54, %v1038_v51  ;;  %v3743_v0 = vrot.slane %v6808_v55, 2  ;;  %v1050_v12 = vor.u32 %v1048_v1, %v1046_v40  ;;  %v6820_v51 = vld [vmem:[%s7011_s30 + $0x48] sm:$0xff]  }
  0x67   : > { %v1082_v49 = vor.u32 %v1080_v42, %v1078_v37  ;;  %v3753_v54 = vrot.slane %v6818_v46, 2  ;;  %v3755_v58 = vrot.slane %v6820_v51, 2 }
  0x68   : > { %v1047_v4 = vsel %vm939_vm4, %v1042_v59, %v1046_v40  ;;  %v3744_v14 = vsel %vm3230_vm3, %v3742_v2, %v3743_v0  ;;  %v3746_v30 = vsel %vm3230_vm3, %v3743_v0, %v3745_v19  ;;  %v6826_v40 = vld [vmem:[%s7011_s30 + $0x18] sm:$0xff]   ;;  %v3757_v2 = vrot.slane %v6823_v60, 2 }
  0x69   : > { %v3754_v61 = vsel %vm3230_vm3, %v3751_v41, %v3753_v54  ;;  %v3756_v0 = vsel %vm3230_vm3, %v3753_v54, %v3755_v58  ;;  %v1568_v1 = vrot.slane %v6826_v40, 1  ;;  %v6837_v41 = vld [vmem:[%s7011_s30 + $0x88] sm:$0xff]   ;;  %v6841_v54 = vld [vmem:[%s7011_s30 + $0x98] sm:$0xff]  }
  0x6a   : > { %v3758_v11 = vsel %vm3230_vm3, %v3755_v58, %v3757_v2  ;;  %v3771_v46 = vrot.slane %v6837_v41, 2  ;;  %v6844_v58 = vld [vmem:[%s7011_s30 + $0x60] sm:$0xff]   ;;  %v6847_v40 = vld [vmem:[%s7011_s30 + $0x68] sm:$0xff]  }
  0x6c   : > { %6127 = vmatmul.mubr.msk.bf16.gmra.mrb[8].mxu1 %vm463_vm1, %v991_v5  ;;  %6291 = vmatmul.mubr.msk.bf16.gmra.mrb[20].mxu0 %vm463_vm1, %v3255_v15  ;;  %v1056_v5 = vshrl.u32 %v6811_v52, 16  ;;  %v1563_v52 = vrot.slane %v6821_v45, 1  ;;  %v6840_v45 = vld [vmem:[%s7011_s30 + $0x50] sm:$0xff]  }
  0x6d   : > { %6130 = vmatprep.mubr.msk.bf16.mxu1 %vm463_vm1, %v999_v9  ;;  %6294 = vmatprep.mubr.msk.bf16.mxu0 %vm463_vm1, %v3257_v18  ;;  %v1054_v9 = vrot.slane %v1052_v62, 1  ;;  %v1068_v18 = vshll.u32 %v6815_v8, 16  ;;  %v1582_v51 = vrot.slane %v6840_v45, 1 }
  0x6f   : > { %v1058_v15 = vor.u32 %v1056_v5, %v1054_v9  ;;  %v1055_v20 = vsel %vm939_vm4, %v1050_v12, %v1054_v9  ;;  %v6830_v9 = vld [vmem:[%s7011_s30 + $0x28] sm:$0xff]   ;;  %v6827_v12 = vld [vmem:[%s7011_s30 + $0x60] sm:$0xff]  }
  0x70   : > { %v3761_v17 = vrot.slane %v6827_v12, 2  ;;  %v6850_v12 = vld [vmem:[%s7011_s30 + $0x28] sm:$0xff]  }
  0x71   : > { %v1063_v24 = vsel %vm939_vm4, %v1058_v15, %v1062_v16  ;;  %v6829_v15 = vld [vmem:[%s7011_s30 + $0x68] sm:$0xff]   ;;  %v1572_v16 = vrot.slane %v6830_v9, 1 }
  0x74   : > { %6131 = vmatmul.mubr.msk.bf16.gmra.mrb[12].mxu1 %vm463_vm1, %v1007_v25  ;;  %6295 = vmatmul.mubr.msk.bf16.gmra.mrb[24].mxu0 %vm463_vm1, %v3259_v34  ;;  %v1072_v25 = vshrl.u32 %v6815_v8, 16  ;;  %v3748_v34 = vsel %vm3230_vm3, %v3745_v19, %v3747_v21  ;;  %v6832_v19 = vld [vmem:[%s7011_s30 + $0x30] sm:$0xff]   ;;  %v1573_v21 = vsel %vm1562_vm5, %v1570_v13, %v1572_v16 }
  0x75   : > { %6134 = vmatprep.mubr.msk.bf16.mxu1 %vm463_vm1, %v1015_v28  ;;  %6298 = vmatprep.mubr.msk.bf16.mxu0 %vm463_vm1, %v3261_v38  ;;  %v1070_v28 = vrot.slane %v1068_v18, 1  ;;  %v7236_v38 = vld [vmem:[%s7760_s1 + $0x20] sm:$0xf]  ;;  %v1571_v18 = vsel %vm1562_vm5, %v1568_v1, %v1570_v13  ;;  %v1574_v26 = vrot.slane %v6832_v19, 1  ;;  %v4275_v19 = vshll.u32 %v6848_v6, 16 }
  0x77   : > { %v1074_v35 = vor.u32 %v1072_v25, %v1070_v28  ;;  %v1071_v57 = vsel %vm939_vm4, %v1066_v31, %v1070_v28  ;;  %v6831_v25 = vld [vmem:[%s7011_s30 + $0x70] sm:$0xff]   ;;  %v6833_v28 = vld [vmem:[%s7011_s30 + $0x78] sm:$0xff]   ;;  %v1575_v31 = vsel %vm1562_vm5, %v1572_v16, %v1574_v26 }
  0x7c   : > { %6135 = vmatmul.mubr.msk.bf16.gmra.mrb[16].mxu1 %vm463_vm1, %v1023_v44  ;;  %6299 = vmatmul.mubr.msk.bf16.gmra.mrb[28].mxu0 %vm463_vm1, %v3263_v53  ;;  %v1079_v44 = vsel %vm939_vm4, %v1074_v35, %v1078_v37  ;;  %v1564_v53 = vrot.slane %v6822_v43, 1  ;;  %v6838_v35 = vld [vmem:[%s7011_s30 + $0x48] sm:$0xff]  }
  0x7d   : > { %6138 = vmatprep.mubr.msk.bf16.mxu1 %vm463_vm1, %v1031_v47  ;;  %6302 = vmatprep.mubr.msk.bf16.mxu0 %vm463_vm1, %v3265_v56  ;;  %v1086_v47 = vrot.slane %v1084_v39, 1  ;;  %v6824_v56 = vld [vmem:[%s7011_s30 + $0x10] sm:$0xff]   ;;  %v6835_v39 = vld [vmem:[%s7011_s30 + $0x80] sm:$0xff]   ;;  %v1580_v42 = vrot.slane %v6838_v35, 1 }
  0x7e   : > { %v1565_v59 = vsel %vm1562_vm5, %v1563_v52, %v1564_v53  ;;  %v1566_v62 = vrot.slane %v6824_v56, 1  ;;  %v3769_v43 = vrot.slane %v6835_v39, 2  ;;  %v6846_v52 = vld [vmem:[%s7011_s30 + $0x18] sm:$0xff]   ;;  %v6845_v56 = vld [vmem:[%s7011_s30 + $0x10] sm:$0xfc]   ;;  %v6853_v39 = vld [vmem:[%s7011_s30 + $0x80] sm:$0xff]  }
  0x7f   : > { %v1087_v55 = vsel %vm939_vm4, %v1082_v49, %v1086_v47  ;;  %v1581_v47 = vsel %vm1562_vm5, %v1578_v7, %v1580_v42  ;;  %v6839_v49 = vld [vmem:[%s7011_s30 + $0x90] sm:$0xff]   ;;  %v1583_v60 = vsel %vm1562_vm5, %v1580_v42, %v1582_v51 }
  0x80   : > { %v1569_v8 = vsel %vm1562_vm5, %v1566_v62, %v1568_v1 }
  0x84   : > { %6139 = vmatmul.mubr.msk.bf16.gmra.mrb[20].mxu1 %vm463_vm1, %v1039_v63  ;;  %6303 = vmatmul.mubr.msk.bf16.gmra.mrb[32].mxu0 %vm463_vm1, %v3267_v10  ;;  %v6825_v63 = vld [vmem:[%s7011_s30 + $0x58] sm:$0xff]   ;;  %v2166_v10 = vsel %vm518_vm0, %v7179_v22, 0  ;;  %v6916_v22 = vld [vmem:[%s7760_s1 + $0x10] sm:$0xf] }
  0x85   : > { %6142 = vmatprep.mubr.msk.bf16.mxu1 %vm463_vm1, %v1047_v4  ;;  %6308 = vmatprep.mubr.msk.bf16.mxu0 %vm463_vm1, %v3744_v14  ;;  %v1567_v4 = vsel %vm1562_vm5, %v1564_v53, %v1566_v62  ;;  %v3759_v5 = vrot.slane %v6825_v63, 2  ;;  %v3772_v53 = vsel %vm3230_vm3, %v3769_v43, %v3771_v46  ;;  %v4263_v62 = vshrl.u32 %v6846_v52, 16 }
  0x86   : > { %v4266_v63 = vshll.u32 %v6846_v52, 16 }
  0x87   : > { %v3760_v14 = vsel %vm3230_vm3, %v3757_v2, %v3759_v5  ;;  %v4255_v2 = vshrl.u32 %v6845_v56, 16  ;;  %v4265_v9 = vrot.slane %v4263_v62, 2 }
  0x8c   : > { %6143 = vmatmul.mubr.msk.bf16.gmra.mrb[24].mxu1 %vm463_vm1, %v1055_v20  ;;  %6309 = vmatmul.mubr.msk.bf16.vlgmr.msra.gmra.mrb[0].mxu0 %vm463_vm1, %v3746_v30  ;;  %v3763_v20 = vrot.slane %v6829_v15, 2  ;;  %v3765_v30 = vrot.slane %v6831_v25, 2  ;;  %v4284_v25 = vshll.u32 %v6850_v12, 16 }
  0x8d   : > { %6146 = vmatprep.mubr.msk.bf16.mxu1 %vm463_vm1, %v1063_v24  ;;  %6345 = vmatpush3.bf16.msra.mxu0 %v4479_v33  ;;  %v3762_v24 = vsel %vm3230_vm3, %v3759_v5, %v3761_v17  ;;  %v3767_v33 = vrot.slane %v6833_v28, 2  ;;  %v1586_v5 = vrot.slane %v6844_v58, 1  ;;  %v6852_v28 = vld [vmem:[%s7011_s30 + $0x30] sm:$0xff]  }
  0x8e   : > { %6312 = vmatprep.mubr.msk.bf16.mxu0 %vm463_vm1, %v3748_v34  ;;  %6719 = vmatprep.subr.msk.bf16.mxu0 %vm518_vm0, %v7236_v38  ;;  %v3764_v27 = vsel %vm3230_vm3, %v3761_v17, %v3763_v20  ;;  %v1577_v34 = vsel %vm1562_vm5, %v1574_v26, %v1576_v29  ;;  %v3766_v37 = vsel %vm3230_vm3, %v3763_v20, %v3765_v30  ;;  %v6849_v17 = vld [vmem:[%s7011_s30 + $0x70] sm:$0xff]   ;;  %v4281_v20 = vshrl.u32 %v6850_v12, 16  ;;  %v6851_v26 = vld [vmem:[%s7011_s30 + $0x78] sm:$0xff]  }
  0x8f   : > { %v4286_v35 = vrot.slane %v4284_v25, 3  ;;  %v6861_v12 = vld [vmem:[%s7011_s30 + $0x50] sm:$0xff]  }
  0x90   : > { %v4283_v32 = vrot.slane %v4281_v20, 2  ;;  %v4329_v20 = vshll.u32 %v6861_v12, 16 }
  0x92   : > { %v4287_v45 = vor.u32 %v4286_v35, %v4283_v32  ;;  %v6865_v32 = vld [vmem:[%s7011_s30 + $0x60] sm:$0xff]  }
  0x94   : > { %6147 = vmatmul.mubr.msk.bf16.gmra.mrb[28].mxu1 %vm463_vm1, %v1071_v57  ;;  %6313 = vmatmul.mubr.msk.bf16.gmra.mrb[4].mxu0 %vm463_vm1, %v3750_v48  ;;  %v3768_v57 = vsel %vm3230_vm3, %v3765_v30, %v3767_v33  ;;  %v6842_v48 = vld [vmem:[%s7011_s30 + $0x58] sm:$0xff]  }
  0x95   : > { %6150 = vmatprep.mubr.msk.bf16.mxu1 %vm463_vm1, %v1079_v44  ;;  %6316 = vmatprep.mubr.msk.bf16.mxu0 %vm463_vm1, %v3752_v50  ;;  %v1579_v44 = vsel %vm1562_vm5, %v1576_v29, %v1578_v7  ;;  %v3770_v50 = vsel %vm3230_vm3, %v3767_v33, %v3769_v43  ;;  %v6854_v33 = vld [vmem:[%s7011_s30 + $0x38] sm:$0xff]   ;;  %v4290_v7 = vshrl.u32 %v6852_v28, 16 }
  0x96   : > { %v4299_v43 = vshrl.u32 %v6854_v33, 16 }
  0x9c   : > { %6151 = vmatmul.mubr.msk.bf16.gmra.mrb[32].mxu1 %vm463_vm1, %v1087_v55  ;;  %6317 = vmatmul.mubr.msk.bf16.gmra.mrb[8].mxu0 %vm463_vm1, %v3754_v61  ;;  %v1584_v55 = vrot.slane %v6842_v48, 1  ;;  %v6843_v61 = vld [vmem:[%s7011_s30 + $0xa0] ss:$0 sps:$4 sm:$0x33]   ;;  %v4292_v48 = vrot.slane %v4290_v7, 2 }
  0x9d   : > { %6156 = vmatprep.mubr.msk.bf16.mxu1 %vm463_vm1, %v1565_v59  ;;  %6320 = vmatprep.mubr.msk.bf16.mxu0 %vm463_vm1, %v3756_v0  ;;  %v3773_v59 = vrot.slane %v6839_v49, 2  ;;  %v3775_v0 = vrot.slane %v6841_v54, 2  ;;  %v3777_v16 = vrot.slane %v6843_v61, 2 }
  0x9e   : > { %v1585_v1 = vsel %vm1562_vm5, %v1582_v51, %v1584_v55  ;;  %v6856_v51 = vld [vmem:[%s7011_s30 + $0x40] sm:$0xff]  }
  0x9f   : > { %v3776_v13 = vsel %vm3230_vm3, %v3773_v59, %v3775_v0  ;;  %v3778_v29 = vsel %vm3230_vm3, %v3775_v0, %v3777_v16  ;;  %v4308_v62 = vshrl.u32 %v6856_v51, 16  ;;  %v6857_v0 = vld [vmem:[%s7011_s30 + $0x90] ss:$0 sps:$4 sm:$0x11]  }
  0xa4   : > { %6157 = vmatmul.mubr.msk.bf16.vlgmr.msra.gmra.mrb[0].mxu1 %vm463_vm1, %v1567_v4  ;;  %6321 = vmatmul.mubr.msk.bf16.gmra.mrb[12].mxu0 %vm463_vm1, %v3758_v11  ;;  %v4258_v4 = vshll.u32 %v6845_v56, 16  ;;  %v1588_v11 = vrot.slane %v6847_v40, 1 }
  0xa5   : > { %6160 = vmatprep.mubr.msk.bf16.mxu1 %vm463_vm1, %v1569_v8  ;;  %6193 = vmatpush3.bf16.msra.mxu1 %v2166_v10  ;;  %v3774_v8 = vsel %vm3230_vm3, %v3771_v46, %v3773_v59  ;;  %v4268_v10 = vrot.slane %v4266_v63, 3  ;;  %v6858_v59 = vld [vmem:[%s7011_s30 + $0x48] sm:$0xff]   ;;  %v4311_v63 = vshll.u32 %v6856_v51, 16 }
  0xa6   : > { %6715 = vmatprep.subr.msk.bf16.mxu1 %vm518_vm0, %v6916_v22  ;;  %6324 = vmatprep.mubr.msk.bf16.mxu0 %vm463_vm1, %v3760_v14  ;;  %v4257_v14 = vrot.slane %v4255_v2, 2  ;;  %v4260_v15 = vrot.slane %v4258_v4, 3  ;;  %v4272_v22 = vshrl.u32 %v6848_v6, 16  ;;  %v4320_v2 = vshll.u32 %v6858_v59, 16  ;;  %v6859_v4 = vld [vmem:[%s7011_s30 + $0x8] sm:$0xfe]  }
  0xa7   : > { %v4269_v23 = vor.u32 %v4268_v10, %v4265_v9  ;;  %v4310_v9 = vrot.slane %v4308_v62, 2  ;;  %v4313_v10 = vrot.slane %v4311_v63, 3  ;;  %v6870_v63 = vld [vmem:[%s7011_s30 + $0x38] sm:$0xff]  }
  0xa8   : > { %v4274_v30 = vrot.slane %v4272_v22, 2  ;;  %v6863_v22 = vld [vmem:[%s7011_s30 + $0x58] sm:$0xff]  }
  0xa9   : > { %v4335_v25 = vshrl.u32 %v6863_v22, 16 }
  0xac   : > { %6161 = vmatmul.mubr.msk.bf16.gmra.mrb[4].mxu1 %vm463_vm1, %v1571_v18  ;;  %6325 = vmatmul.mubr.msk.bf16.gmra.mrb[16].mxu0 %vm463_vm1, %v3762_v24  ;;  %v1587_v18 = vsel %vm1562_vm5, %v1584_v55, %v1586_v5  ;;  %v1589_v24 = vsel %vm1562_vm5, %v1586_v5, %v1588_v11  ;;  %v4991_v55 = vsel %vm518_vm0, %v7236_v38, 0  ;;  %v6860_v5 = vld [vmem:[%s7011_s30 + $0x10] sm:$0xff]  }
  0xad   : > { %6164 = vmatprep.mubr.msk.bf16.mxu1 %vm463_vm1, %v1573_v21  ;;  %6328 = vmatprep.mubr.msk.bf16.mxu0 %vm463_vm1, %v3764_v27  ;;  %v4261_v21 = vor.u32 %v4260_v15, %v4257_v14  ;;  %v1590_v27 = vrot.slane %v6849_v17, 1  ;;  %v4322_v14 = vrot.slane %v4320_v2, 3  ;;  %v2074_v15 = vrot.slane %v6859_v4, 1  ;;  %v6872_v2 = vld [vmem:[%s7011_s30 + $0x40] sm:$0xff]  }
  0xae   : > { %v2075_v16 = vrot.slane %v6860_v5, 1  ;;  %v4314_v17 = vor.u32 %v4313_v10, %v4310_v9  ;;  %v6873_v9 = vld [vmem:[%s7011_s30 + $0x80] sm:$0xff]  }
  0xaf   : > { %v1591_v42 = vsel %vm1562_vm5, %v1588_v11, %v1590_v27  ;;  %v1598_v11 = vrot.slane %v6857_v0, 1 }
  0xb4   : > { %6165 = vmatmul.mubr.msk.bf16.gmra.mrb[8].mxu1 %vm463_vm1, %v1575_v31  ;;  %6329 = vmatmul.mubr.msk.bf16.gmra.mrb[20].mxu0 %vm463_vm1, %v3766_v37  ;;  %v4277_v31 = vrot.slane %v4275_v19, 3  ;;  %v1592_v37 = vrot.slane %v6851_v26, 1  ;;  %v4326_v19 = vshrl.u32 %v6861_v12, 16  ;;  %v4338_v26 = vshll.u32 %v6863_v22, 16 }
  0xb5   : > { %6168 = vmatprep.mubr.msk.bf16.mxu1 %vm463_vm1, %v1577_v34  ;;  %6332 = vmatprep.mubr.msk.bf16.mxu0 %vm463_vm1, %v3768_v57  ;;  %v4270_v34 = vsel %vm4253_vm6, %v4261_v21, %v4269_v23  ;;  %v4293_v57 = vshll.u32 %v6852_v28, 16  ;;  %v6862_v21 = vld [vmem:[%s7011_s30 + $0x18] sm:$0xff]   ;;  %v4380_v22 = vshrl.u32 %v6873_v9, 16 }
  0xb6   : > { %v4278_v41 = vor.u32 %v4277_v31, %v4274_v30  ;;  %v1593_v46 = vsel %vm1562_vm5, %v1590_v27, %v1592_v37  ;;  %v6864_v27 = vld [vmem:[%s7011_s30 + $0x20] sm:$0xff]   ;;  %v4331_v30 = vrot.slane %v4329_v20, 3  ;;  %v2077_v31 = vrot.slane %v6862_v21, 1 }
  0xb7   : > { %v4295_v49 = vrot.slane %v4293_v57, 3  ;;  %v4340_v35 = vrot.slane %v4338_v26, 3  ;;  %v4382_v26 = vrot.slane %v4380_v22, 2 }
  0xb8   : > { %v4279_v52 = vsel %vm4253_vm6, %v4269_v23, %v4278_v41  ;;  %v4288_v56 = vsel %vm4253_vm6, %v4278_v41, %v4287_v45  ;;  %v2078_v57 = vsel %vm1562_vm5, %v2075_v16, %v2077_v31  ;;  %v4344_v41 = vshrl.u32 %v6865_v32, 16 }
  0xb9   : > { %v4296_v40 = vor.u32 %v4295_v49, %v4292_v48  ;;  %v6868_v48 = vld [vmem:[%s7011_s30 + $0x30] sm:$0xff]  }
  0xbb   : > { %v4297_v6 = vsel %vm4253_vm6, %v4287_v45, %v4296_v40 }
  0xbc   : > { %6169 = vmatmul.mubr.msk.bf16.gmra.mrb[12].mxu1 %vm463_vm1, %v1579_v44  ;;  %6333 = vmatmul.mubr.msk.bf16.gmra.mrb[24].mxu0 %vm463_vm1, %v3770_v50  ;;  %v4302_v44 = vshll.u32 %v6854_v33, 16  ;;  %v1594_v50 = vrot.slane %v6853_v39, 1  ;;  %v6867_v39 = vld [vmem:[%s7011_s30 + $0x68] sm:$0xff]  }
  0xbd   : > { %6172 = vmatprep.mubr.msk.bf16.mxu1 %vm463_vm1, %v1581_v47  ;;  %6336 = vmatprep.mubr.msk.bf16.mxu0 %vm463_vm1, %v3772_v53  ;;  %v6855_v47 = vld [vmem:[%s7011_s30 + $0x88] sm:$0xff]   ;;  %v4301_v53 = vrot.slane %v4299_v43, 2 }
  0xbe   : > { %v4304_v54 = vrot.slane %v4302_v44, 3  ;;  %v1596_v58 = vrot.slane %v6855_v47, 1  ;;  %v6866_v43 = vld [vmem:[%s7011_s30 + $0x28] sm:$0xff]   ;;  %v4356_v47 = vshll.u32 %v6867_v39, 16 }
  0xc0   : > { %v4305_v61 = vor.u32 %v4304_v54, %v4301_v53  ;;  %v1597_v38 = vsel %vm1562_vm5, %v1594_v50, %v1596_v58  ;;  %v6869_v53 = vld [vmem:[%s7011_s30 + $0x70] sm:$0xff]  }
  0xc1   : > { %v4365_v62 = vshll.u32 %v6869_v53, 16 }
  0xc2   : > { %v4315_v28 = vsel %vm4253_vm6, %v4305_v61, %v4314_v17 }
  0xc4   : > { %6173 = vmatmul.mubr.msk.bf16.gmra.mrb[16].mxu1 %vm463_vm1, %v1583_v60  ;;  %6337 = vmatmul.mubr.msk.bf16.gmra.mrb[28].mxu0 %vm463_vm1, %v3774_v8  ;;  %v1595_v60 = vsel %vm1562_vm5, %v1592_v37, %v1594_v50  ;;  %v4306_v8 = vsel %vm4253_vm6, %v4296_v40, %v4305_v61  ;;  %v2079_v37 = vrot.slane %v6864_v27, 1  ;;  %v4346_v50 = vrot.slane %v4344_v41, 2 }
  0xc5   : > { %6176 = vmatprep.mubr.msk.bf16.mxu1 %vm463_vm1, %v1585_v1  ;;  %6340 = vmatprep.mubr.msk.bf16.mxu0 %vm463_vm1, %v3776_v13  ;;  %v4317_v1 = vshrl.u32 %v6858_v59, 16  ;;  %v6871_v59 = vld [vmem:[%s7011_s30 + $0x78] sm:$0xff]   ;;  %v4362_v61 = vshrl.u32 %v6869_v53, 16 }
  0xc6   : > { %v2080_v45 = vsel %vm1562_vm5, %v2077_v31, %v2079_v37 }
  0xc7   : > { %v4319_v13 = vrot.slane %v4317_v1, 2  ;;  %v4374_v1 = vshll.u32 %v6871_v59, 16  ;;  %v4364_v5 = vrot.slane %v4362_v61, 2 }
  0xc9   : > { %v4323_v23 = vor.u32 %v4322_v14, %v4319_v13  ;;  %v4376_v12 = vrot.slane %v4374_v1, 3  ;;  %v2087_v13 = vrot.slane %v6872_v2, 1  ;;  %v6875_v14 = vld [vmem:[%s7011_s30 + $0x88] sm:$0xff]   ;;  %v6883_v2 = vld [vmem:[%s7011_s30 + $0x10] sm:$0xf8]  }
  0xca   : > { %v4389_v21 = vshrl.u32 %v6875_v14, 16 }
  0xcb   : > { %v4324_v33 = vsel %vm4253_vm6, %v4314_v17, %v4323_v23  ;;  %v4383_v17 = vshll.u32 %v6873_v9, 16  ;;  %v6887_v9 = vld [vmem:[%s7011_s30 + $0x78] sm:$0xff]  }
  0xcc   : > { %6177 = vmatmul.mubr.msk.bf16.gmra.mrb[20].mxu1 %vm463_vm1, %v1587_v18  ;;  %6341 = vmatmul.mubr.msk.bf16.gmra.mrb[32].mxu0 %vm463_vm1, %v3778_v29  ;;  %v1599_v18 = vsel %vm1562_vm5, %v1596_v58, %v1598_v11  ;;  %v4328_v29 = vrot.slane %v4326_v19, 2  ;;  %v2083_v58 = vrot.slane %v6868_v48, 1  ;;  %v4391_v31 = vrot.slane %v4389_v21, 2  ;;  %v6891_v21 = vld [vmem:[%s7011_s30 + $0x88] sm:$0xff]  }
  0xcd   : > { %6180 = vmatprep.mubr.msk.bf16.mxu1 %vm463_vm1, %v1589_v24  ;;  %6346 = vmatprep.mubr.msk.bf16.mxu0 %vm463_vm1, %v4270_v34  ;;  %v2076_v24 = vsel %vm1562_vm5, %v2074_v15, %v2075_v16  ;;  %v4337_v34 = vrot.slane %v4335_v25, 2  ;;  %v4385_v27 = vrot.slane %v4383_v17, 3  ;;  %v6888_v17 = vld [vmem:[%s7011_s30 + $0x28] sm:$0xff]  }
  0xce   : > { %v4332_v7 = vor.u32 %v4331_v30, %v4328_v29  ;;  %v6877_v29 = vld [vmem:[%s7011_s30 + $0x90] sm:$0xff]  }
  0xcf   : > { %v4341_v44 = vor.u32 %v4340_v35, %v4337_v34  ;;  %v6879_v34 = vld [vmem:[%s7011_s30 + $0x98] sm:$0xff]   ;;  %v4386_v35 = vor.u32 %v4385_v27, %v4382_v26  ;;  %v6897_v26 = vld [vmem:[%s7011_s30 + $0x60] sm:$0xff]  }
  0xd0   : > { %v4333_v49 = vsel %vm4253_vm6, %v4323_v23, %v4332_v7  ;;  %v4392_v23 = vshll.u32 %v6875_v14, 16 }
  0xd1   : > { %v4342_v54 = vsel %vm4253_vm6, %v4332_v7, %v4341_v44  ;;  %v4401_v7 = vshll.u32 %v6877_v29, 16 }
  0xd3   : > { %v4403_v48 = vrot.slane %v4401_v7, 3  ;;  %v6899_v7 = vld [vmem:[%s7011_s30 + $0x68] sm:$0xff]  }
  0xd4   : > { %6181 = vmatmul.mubr.msk.bf16.gmra.mrb[24].mxu1 %vm463_vm1, %v1591_v42  ;;  %6347 = vmatmul.mubr.msk.bf16.vlgmr.msra.gmra.mrb[0].mxu0 %vm463_vm1, %v4279_v52  ;;  %v4347_v42 = vshll.u32 %v6865_v32, 16  ;;  %v2081_v52 = vrot.slane %v6866_v43, 1  ;;  %v4394_v32 = vrot.slane %v4392_v23, 3  ;;  %v4407_v43 = vshrl.u32 %v6879_v34, 16 }
  0xd5   : > { %6184 = vmatprep.mubr.msk.bf16.mxu1 %vm463_vm1, %v1593_v46  ;;  %6383 = vmatpush3.bf16.msra.mxu0 %v4991_v55  ;;  %v4353_v46 = vshrl.u32 %v6867_v39, 16  ;;  %v4398_v39 = vshrl.u32 %v6877_v29, 16  ;;  %v4904_v23 = vrot.slane %v6888_v17, 3  ;;  %v2105_v29 = vrot.slane %v6891_v21, 1 }
  0xd6   : > { %6350 = vmatprep.mubr.msk.bf16.mxu0 %vm463_vm1, %v4288_v56  ;;  %v4349_v51 = vrot.slane %v4347_v42, 3  ;;  %v4358_v56 = vrot.slane %v4356_v47, 3  ;;  %v2084_v0 = vsel %vm1562_vm5, %v2081_v52, %v2083_v58  ;;  %v4395_v41 = vor.u32 %v4394_v32, %v4391_v31  ;;  %v6892_v31 = vld [vmem:[%s7011_s30 + $0x38] sm:$0xff]  }
  0xd7   : > { %v4355_v55 = vrot.slane %v4353_v46, 2  ;;  %v4400_v47 = vrot.slane %v4398_v39, 2  ;;  %v6895_v39 = vld [vmem:[%s7011_s30 + $0x98] ss:$0 sps:$4 sm:$0x11]  }
  0xd8   : > { %v4350_v40 = vor.u32 %v4349_v51, %v4346_v50  ;;  %v6881_v50 = vld [vmem:[%s7011_s30 + $0xa0] ss:$0 sps:$4 sm:$0x77]   ;;  %v4396_v51 = vsel %vm4253_vm6, %v4386_v35, %v4395_v41 }
  0xda   : > { %v4351_v4 = vsel %vm4253_vm6, %v4341_v44, %v4350_v40  ;;  %v4410_v44 = vshll.u32 %v6879_v34, 16  ;;  %v2688_v34 = vshll.u32 %v6897_v26, 16 }
  0xdc   : > { %6185 = vmatmul.mubr.msk.bf16.gmra.mrb[28].mxu1 %vm463_vm1, %v1595_v60  ;;  %6351 = vmatmul.mubr.msk.bf16.gmra.mrb[4].mxu0 %vm463_vm1, %v4297_v6  ;;  %v2082_v60 = vsel %vm1562_vm5, %v2079_v37, %v2081_v52  ;;  %v4367_v6 = vrot.slane %v4365_v62, 3  ;;  %v4409_v52 = vrot.slane %v4407_v43, 2  ;;  %v4412_v53 = vrot.slane %v4410_v44, 3  ;;  %v6885_v62 = vld [vmem:[%s7011_s30 + $0x70] sm:$0xff]  }
  0xdd   : > { %6188 = vmatprep.mubr.msk.bf16.mxu1 %vm463_vm1, %v1597_v38  ;;  %6354 = vmatprep.mubr.msk.bf16.mxu0 %vm463_vm1, %v4306_v8  ;;  %v4371_v38 = vshrl.u32 %v6871_v59, 16  ;;  %v2085_v8 = vrot.slane %v6870_v63, 1  ;;  %v4419_v59 = vshll.u32 %v6881_v50, 16  ;;  %v2690_v43 = vrot.slane %v2688_v34, 2  ;;  %v6901_v44 = vld [vmem:[%s7011_s30 + $0x70] sm:$0xff]  }
  0xde   : > { %v4368_v15 = vor.u32 %v4367_v6, %v4364_v5  ;;  %v2099_v5 = vrot.slane %v6885_v62, 1  ;;  %v6911_v34 = vld [vmem:[%s7011_s30 + $0x98] ss:$0 sps:$4 sm:$0x33]  }
  0xdf   : > { %v4373_v11 = vrot.slane %v4371_v38, 2  ;;  %v2086_v16 = vsel %vm1562_vm5, %v2083_v58, %v2085_v8  ;;  %v2088_v20 = vsel %vm1562_vm5, %v2085_v8, %v2087_v13  ;;  %v4416_v58 = vshrl.u32 %v6881_v50, 16 }
  0xe1   : > { %v4377_v19 = vor.u32 %v4376_v12, %v4373_v11 }
  0xe3   : > { %v4378_v30 = vsel %vm4253_vm6, %v4368_v15, %v4377_v19  ;;  %v4387_v46 = vsel %vm4253_vm6, %v4377_v19, %v4386_v35 }
  0xe4   : > { %6189 = vmatmul.mubr.msk.bf16.gmra.mrb[32].mxu1 %vm463_vm1, %v1599_v18  ;;  %6355 = vmatmul.mubr.msk.bf16.gmra.mrb[8].mxu0 %vm463_vm1, %v4315_v28  ;;  %v6874_v18 = vld [vmem:[%s7011_s30 + $0x48] sm:$0xff]  }
  0xe5   : > { %6194 = vmatprep.mubr.msk.bf16.mxu1 %vm463_vm1, %v2076_v24  ;;  %6358 = vmatprep.mubr.msk.bf16.mxu0 %vm463_vm1, %v4324_v33  ;;  %v6876_v24 = vld [vmem:[%s7011_s30 + $0x50] sm:$0xff]   ;;  %v2089_v28 = vrot.slane %v6874_v18, 1 }
  0xe6   : > { %v2091_v33 = vrot.slane %v6876_v24, 1 }
  0xe7   : > { %v2090_v37 = vsel %vm1562_vm5, %v2087_v13, %v2089_v28  ;;  %v6889_v13 = vld [vmem:[%s7011_s30 + $0x80] sm:$0xff]  }
  0xe8   : > { %v2092_v42 = vsel %vm1562_vm5, %v2089_v28, %v2091_v33  ;;  %v2103_v18 = vrot.slane %v6889_v13, 1  ;;  %v6890_v28 = vld [vmem:[%s7011_s30 + $0x30] sm:$0xff]  }
  0xe9   : > { %v4906_v35 = vrot.slane %v6890_v28, 3 }
  0xec   : > { %6195 = vmatmul.mubr.msk.bf16.vlgmr.msra.gmra.mrb[0].mxu1 %vm463_vm1, %v2078_v57  ;;  %6359 = vmatmul.mubr.msk.bf16.gmra.mrb[12].mxu0 %vm463_vm1, %v4333_v49  ;;  %v6878_v57 = vld [vmem:[%s7011_s30 + $0x58] sm:$0xff]  }
  0xed   : > { %6198 = vmatprep.mubr.msk.bf16.mxu1 %vm463_vm1, %v2080_v45  ;;  %6421 = vmatpush3.bf16.msra.mxu1 %v6996_v3  ;;  %v4359_v3 = vor.u32 %v4358_v56, %v4355_v55  ;;  %v6880_v45 = vld [vmem:[%s7011_s30 + $0x60] sm:$0xff]   ;;  %v2093_v49 = vrot.slane %v6878_v57, 1  ;;  %v4404_v55 = vor.u32 %v4403_v48, %v4400_v47  ;;  %v4908_v57 = vrot.slane %v6892_v31, 3 }
  0xee   : > { %6362 = vmatprep.mubr.msk.bf16.mxu0 %vm463_vm1, %v4342_v54  ;;  %v2095_v54 = vrot.slane %v6880_v45, 1  ;;  %v4907_v45 = vsel %vm4898_vm7, %v4904_v23, %v4906_v35  ;;  %v2109_v47 = vrot.slane %v6895_v39, 1  ;;  %v2694_v48 = vshrl.u32 %v6899_v7, 16 }
  0xef   : > { %v4360_v10 = vsel %vm4253_vm6, %v4350_v40, %v4359_v3  ;;  %v4369_v25 = vsel %vm4253_vm6, %v4359_v3, %v4368_v15  ;;  %v2094_v56 = vsel %vm1562_vm5, %v2091_v33, %v2093_v49  ;;  %v6882_v40 = vld [vmem:[%s7011_s30 + $0x68] sm:$0xff]   ;;  %v4405_v63 = vsel %vm4253_vm6, %v4395_v41, %v4404_v55  ;;  %v6886_v15 = vld [vmem:[%s7011_s30 + $0x20] sm:$0xff]  }
  0xf0   : > { %v2096_v61 = vsel %vm1562_vm5, %v2093_v49, %v2095_v54  ;;  %v4418_v3 = vrot.slane %v4416_v58, 2  ;;  %v2097_v38 = vrot.slane %v6882_v40, 1  ;;  %v4902_v19 = vrot.slane %v6886_v15, 3  ;;  %v6903_v40 = vld [vmem:[%s7011_s30 + $0x78] sm:$0xff]  }
  0xf1   : > { %v2685_v33 = vshrl.u32 %v6897_v26, 16  ;;  %v2697_v49 = vshll.u32 %v6899_v7, 16  ;;  %v4909_v50 = vsel %vm4898_vm7, %v4906_v35, %v4908_v57  ;;  %v2696_v58 = vrot.slane %v2694_v48, 1  ;;  %v6904_v26 = vld [vmem:[%s7011_s30 + $0x68] sm:$0xff]  }
  0xf2   : > { %v2098_v8 = vsel %vm1562_vm5, %v2095_v54, %v2097_v38  ;;  %v2100_v12 = vsel %vm1562_vm5, %v2097_v38, %v2099_v5  ;;  %v2706_v54 = vshll.u32 %v6901_v44, 16  ;;  %v6898_v38 = vld [vmem:[%s7011_s30 + $0x50] sm:$0xff]   ;;  %v4920_v35 = vrot.slane %v6904_v26, 3 }
  0xf4   : > { %6199 = vmatmul.mubr.msk.bf16.gmra.mrb[4].mxu1 %vm463_vm1, %v2082_v60  ;;  %6363 = vmatmul.mubr.msk.bf16.gmra.mrb[16].mxu0 %vm463_vm1, %v4351_v4  ;;  %v4413_v60 = vor.u32 %v4412_v53, %v4409_v52  ;;  %v6884_v4 = vld [vmem:[%s7011_s30 + $0x18] sm:$0xff]   ;;  %v2703_v53 = vshrl.u32 %v6901_v44, 16  ;;  %v2751_v44 = vshll.u32 %v6911_v34, 16 }
  0xf5   : > { %6202 = vmatprep.mubr.msk.bf16.mxu1 %vm463_vm1, %v2084_v0  ;;  %6366 = vmatprep.mubr.msk.bf16.mxu0 %vm463_vm1, %v4360_v10  ;;  %v4421_v0 = vrot.slane %v4419_v59, 3  ;;  %v4899_v10 = vrot.slane %v6883_v2, 3  ;;  %v4900_v11 = vrot.slane %v6884_v4, 3  ;;  %v2699_v59 = vrot.slane %v2697_v49, 2 }
  0xf6   : > { %v4414_v1 = vsel %vm4253_vm6, %v4404_v55, %v4413_v60  ;;  %v2705_v62 = vrot.slane %v2703_v53, 1  ;;  %v2712_v2 = vshrl.u32 %v6903_v40, 16  ;;  %v2715_v4 = vshll.u32 %v6903_v40, 16 }
  0xf7   : > { %v4422_v6 = vor.u32 %v4421_v0, %v4418_v3  ;;  %v4901_v22 = vsel %vm4898_vm7, %v4899_v10, %v4900_v11  ;;  %v4903_v27 = vsel %vm4898_vm7, %v4900_v11, %v4902_v19  ;;  %v6905_v3 = vld [vmem:[%s7011_s30 + $0x80] sm:$0xff]   ;;  %v4914_v10 = vrot.slane %v6898_v38, 3 }
  0xf8   : > { %v2717_v13 = vrot.slane %v2715_v4, 2  ;;  %v6915_v4 = vld [vmem:[%s7011_s30 + $0xa0] ss:$0 sps:$4 sm:$0x77]  }
  0xf9   : > { %v4423_v14 = vsel %vm4253_vm6, %v4413_v60, %v4422_v6  ;;  %v6900_v6 = vld [vmem:[%s7011_s30 + $0x58] sm:$0xff]  }
  0xfa   : > { %v4916_v15 = vrot.slane %v6900_v6, 3  ;;  %v4934_v6 = vrot.slane %v6915_v4, 3 }
  0xfc   : > { %6203 = vmatmul.mubr.msk.bf16.gmra.mrb[8].mxu1 %vm463_vm1, %v2086_v16  ;;  %6367 = vmatmul.mubr.msk.bf16.gmra.mrb[20].mxu0 %vm463_vm1, %v4369_v25  ;;  %v2101_v16 = vrot.slane %v6887_v9, 1  ;;  %v6893_v25 = vld [vmem:[%s7011_s30 + $0x90] sm:$0xff]   ;;  %v2724_v9 = vshll.u32 %v6905_v3, 16 }
  0xfd   : > { %6206 = vmatprep.mubr.msk.bf16.mxu1 %vm463_vm1, %v2088_v20  ;;  %6370 = vmatprep.mubr.msk.bf16.mxu0 %vm463_vm1, %v4378_v30  ;;  %v4905_v30 = vsel %vm4898_vm7, %v4902_v19, %v4904_v23  ;;  %v2107_v32 = vrot.slane %v6893_v25, 1  ;;  %v4917_v25 = vsel %vm4898_vm7, %v4914_v10, %v4916_v15 }
  0xfe   : > { %v2102_v20 = vsel %vm1562_vm5, %v2099_v5, %v2101_v16  ;;  %v2104_v24 = vsel %vm1562_vm5, %v2101_v16, %v2103_v18  ;;  %v2726_v17 = vrot.slane %v2724_v9, 2 }
  0xff   : > { %v2108_v41 = vsel %vm1562_vm5, %v2105_v29, %v2107_v32 }
 0x104   : > { %6207 = vmatmul.mubr.msk.bf16.gmra.mrb[12].mxu1 %vm463_vm1, %v2090_v37  ;;  %6371 = vmatmul.mubr.msk.bf16.gmra.mrb[24].mxu0 %vm463_vm1, %v4387_v46  ;;  %v2106_v37 = vsel %vm1562_vm5, %v2103_v18, %v2105_v29  ;;  %v6894_v46 = vld [vmem:[%s7011_s30 + $0x40] sm:$0xff]   ;;  %v6909_v18 = vld [vmem:[%s7011_s30 + $0x90] sm:$0xff]  }
 0x105   : > { %6210 = vmatprep.mubr.msk.bf16.mxu1 %vm463_vm1, %v2092_v42  ;;  %6374 = vmatprep.mubr.msk.bf16.mxu0 %vm463_vm1, %v4396_v51  ;;  %v2687_v42 = vrot.slane %v2685_v33, 1  ;;  %v6896_v51 = vld [vmem:[%s7011_s30 + $0x48] sm:$0xff]   ;;  %v4910_v55 = vrot.slane %v6894_v46, 3  ;;  %v2739_v28 = vshrl.u32 %v6909_v18, 16  ;;  %v2742_v29 = vshll.u32 %v6909_v18, 16  ;;  %v6908_v46 = vld [vmem:[%s7011_s30 + $0x78] sm:$0xff]  }
 0x106   : > { %v4912_v60 = vrot.slane %v6896_v51, 3  ;;  %v2753_v51 = vrot.slane %v2751_v44, 2 }
 0x107   : > { %v2691_v52 = vor.u32 %v2690_v43, %v2687_v42  ;;  %v4911_v0 = vsel %vm4898_vm7, %v4908_v57, %v4910_v55  ;;  %v2741_v39 = vrot.slane %v2739_v28, 1  ;;  %v2744_v7 = vrot.slane %v2742_v29, 2  ;;  %v7570_v29 = vld [vmem:[%s7761_s2] ss:$0 sm:$0xff] }
 0x108   : > { %v4913_v5 = vsel %vm4898_vm7, %v4910_v55, %v4912_v60  ;;  %v4915_v19 = vsel %vm4898_vm7, %v4912_v60, %v4914_v10  ;;  %v2748_v43 = vshrl.u32 %v6911_v34, 16  ;;  %v6910_v55 = vld [vmem:[%s7011_s30 + $0x80] sm:$0xff]  }
 0x109   : > { %v4926_v40 = vrot.slane %v6910_v55, 3 }
 0x10c   : > { %6211 = vmatmul.mubr.msk.bf16.gmra.mrb[16].mxu1 %vm463_vm1, %v2094_v56  ;;  %6375 = vmatmul.mubr.msk.bf16.gmra.mrb[28].mxu0 %vm463_vm1, %v4405_v63  ;;  %v2110_v56 = vsel %vm1562_vm5, %v2107_v32, %v2109_v47  ;;  %v2708_v63 = vrot.slane %v2706_v54, 2  ;;  %v2745_v47 = vor.u32 %v2744_v7, %v2741_v39 }
 0x10d   : > { %6214 = vmatprep.mubr.msk.bf16.mxu1 %vm463_vm1, %v2096_v61  ;;  %6378 = vmatprep.mubr.msk.bf16.mxu0 %vm463_vm1, %v4414_v1  ;;  %v2692_v61 = vsel %vm2585_vm2, %v7083_v36, %v2691_v52  ;;  %v2700_v1 = vor.u32 %v2699_v59, %v2696_v58  ;;  %v2721_v36 = vshrl.u32 %v6905_v3, 16  ;;  %v6912_v59 = vld [vmem:[%s7011_s30 + $0x88] sm:$0xff]  }
 0x10f   : > { %v2701_v11 = vsel %vm2585_vm2, %v2691_v52, %v2700_v1  ;;  %v4924_v52 = vrot.slane %v6908_v46, 3 }
 0x114   : > { %6215 = vmatmul.mubr.msk.bf16.gmra.mrb[20].mxu1 %vm463_vm1, %v2098_v8  ;;  %6379 = vmatmul.mubr.msk.bf16.gmra.mrb[32].mxu0 %vm463_vm1, %v4423_v14  ;;  %v2709_v8 = vor.u32 %v2708_v63, %v2705_v62  ;;  %v6907_v14 = vld [vmem:[%s7011_s30 + $0x88] sm:$0xff]   ;;  %v4927_v62 = vsel %vm4898_vm7, %v4924_v52, %v4926_v40  ;;  %v6913_v63 = vld [vmem:[%s7011_s30 + $0x90] sm:$0xff]  }
 0x115   : > { %6218 = vmatprep.mubr.msk.bf16.mxu1 %vm463_vm1, %v2100_v12  ;;  %6384 = vmatprep.mubr.msk.bf16.mxu0 %vm463_vm1, %v4901_v22  ;;  %v2714_v12 = vrot.slane %v2712_v2, 1  ;;  %v2723_v22 = vrot.slane %v2721_v36, 1  ;;  %v2730_v23 = vshrl.u32 %v6907_v14, 16  ;;  %v4930_v38 = vrot.slane %v6913_v63, 3 }
 0x116   : > { %v2710_v16 = vsel %vm2585_vm2, %v2700_v1, %v2709_v8 }
 0x117   : > { %v2718_v21 = vor.u32 %v2717_v13, %v2714_v12  ;;  %v2732_v32 = vrot.slane %v2730_v23, 1 }
 0x119   : > { %v2719_v31 = vsel %vm2585_vm2, %v2709_v8, %v2718_v21 }
 0x11c   : > { %6219 = vmatmul.mubr.msk.bf16.gmra.mrb[24].mxu1 %vm463_vm1, %v2102_v20  ;;  %6385 = vmatmul.mubr.msk.bf16.vlgmr.msra.gmra.mrb[0].mxu0 %vm463_vm1, %v4903_v27  ;;  %v6902_v20 = vld [vmem:[%s7011_s30 + $0x60] sm:$0xff]   ;;  %v2727_v27 = vor.u32 %v2726_v17, %v2723_v22 }
 0x11d   : > { %6222 = vmatprep.mubr.msk.bf16.mxu1 %vm463_vm1, %v2104_v24  ;;  %6388 = vmatprep.mubr.msk.bf16.mxu0 %vm463_vm1, %v4905_v30  ;;  %v2733_v24 = vshll.u32 %v6907_v14, 16  ;;  %v4918_v30 = vrot.slane %v6902_v20, 3 }
 0x11f   : > { %v2735_v33 = vrot.slane %v2733_v24, 2  ;;  %v4919_v57 = vsel %vm4898_vm7, %v4916_v15, %v4918_v30 }
 0x121   : > { %v2736_v42 = vor.u32 %v2735_v33, %v2732_v32  ;;  %v7576_v32 = vld [vmem:[%s7762_s3] ss:$0 sm:$0xff] }
 0x123   : > { %v2737_v49 = vsel %vm2585_vm2, %v2727_v27, %v2736_v42  ;;  %v2746_v53 = vsel %vm2585_vm2, %v2736_v42, %v2745_v47 }
 0x124   : > { %6223 = vmatmul.mubr.msk.bf16.gmra.mrb[28].mxu1 %vm463_vm1, %v2106_v37  ;;  %6389 = vmatmul.mubr.msk.bf16.gmra.mrb[4].mxu0 %vm463_vm1, %v4907_v45  ;;  %v2728_v37 = vsel %vm2585_vm2, %v2718_v21, %v2727_v27  ;;  %v4921_v45 = vsel %vm4898_vm7, %v4918_v30, %v4920_v35 }
 0x125   : > { %6226 = vmatprep.mubr.msk.bf16.mxu1 %vm463_vm1, %v2108_v41  ;;  %6392 = vmatprep.mubr.msk.bf16.mxu0 %vm463_vm1, %v4909_v50  ;;  %v6906_v41 = vld [vmem:[%s7011_s30 + $0x70] sm:$0xff]   ;;  %v2750_v50 = vrot.slane %v2748_v43, 1 }
 0x126   : > { %v4922_v48 = vrot.slane %v6906_v41, 3 }
 0x128   : > { %v4923_v54 = vsel %vm4898_vm7, %v4920_v35, %v4922_v48  ;;  %v4925_v58 = vsel %vm4898_vm7, %v4922_v48, %v4924_v52 }
 0x12c   : > { %6227 = vmatmul.mubr.msk.bf16.gmra.mrb[32].mxu1 %vm463_vm1, %v2110_v56  ;;  %6393 = vmatmul.mubr.msk.bf16.gmra.mrb[8].mxu0 %vm463_vm1, %v4911_v0  ;;  %v2754_v56 = vor.u32 %v2753_v51, %v2750_v50  ;;  %v6914_v0 = vld [vmem:[%s7011_s30 + $0x98] sm:$0xff]  }
 0x12d   : > { %6252 = vmatprep.mubr.msk.bf16.mxu1 %vm463_vm1, %v2692_v61  ;;  %6396 = vmatprep.mubr.msk.bf16.mxu0 %vm463_vm1, %v4913_v5  ;;  %v4928_v61 = vrot.slane %v6912_v59, 3  ;;  %v4932_v1 = vrot.slane %v6914_v0, 3 }
 0x12e   : > { %v2755_v60 = vsel %vm2585_vm2, %v2745_v47, %v2754_v56 }
 0x12f   : > { %v4929_v3 = vsel %vm4898_vm7, %v4926_v40, %v4928_v61  ;;  %v4931_v2 = vsel %vm4898_vm7, %v4928_v61, %v4930_v38  ;;  %v4933_v5 = vsel %vm4898_vm7, %v4930_v38, %v4932_v1  ;;  %v4935_v8 = vsel %vm4898_vm7, %v4932_v1, %v4934_v6 }
 0x134   : > { %6253 = vmatmul.mubr.msk.bf16.vlgmr.msra.gmra.mrb[20].mxu1 %vm463_vm1, %v2701_v11  ;;  %6397 = vmatmul.mubr.msk.bf16.gmra.mrb[12].mxu0 %vm463_vm1, %v4915_v19 }
 0x135   : > { %6256 = vmatprep.mubr.msk.bf16.mxu1 %vm463_vm1, %v2710_v16  ;;  %6400 = vmatprep.mubr.msk.bf16.mxu0 %vm463_vm1, %v4917_v25 }
 0x13c   : > { %6257 = vmatmul.mubr.msk.bf16.gmra.mrb[24].mxu1 %vm463_vm1, %v2719_v31  ;;  %6401 = vmatmul.mubr.msk.bf16.gmra.mrb[16].mxu0 %vm463_vm1, %v4919_v57 }
 0x13d   : > { %6260 = vmatprep.mubr.msk.bf16.mxu1 %vm463_vm1, %v2728_v37  ;;  %6404 = vmatprep.mubr.msk.bf16.mxu0 %vm463_vm1, %v4921_v45 }
 0x144   : > { %6261 = vmatmul.mubr.msk.bf16.gmra.mrb[28].mxu1 %vm463_vm1, %v2737_v49  ;;  %6405 = vmatmul.mubr.msk.bf16.gmra.mrb[20].mxu0 %vm463_vm1, %v4923_v54 }
 0x145   : > { %6264 = vmatprep.mubr.msk.bf16.mxu1 %vm463_vm1, %v2746_v53  ;;  %6408 = vmatprep.mubr.msk.bf16.mxu0 %vm463_vm1, %v4925_v58 }
 0x14c   : > { %6265 = vmatmul.mubr.msk.bf16.gmra.mrb[32].mxu1 %vm463_vm1, %v2755_v60  ;;  %6409 = vmatmul.mubr.msk.bf16.gmra.mrb[24].mxu0 %vm463_vm1, %v4927_v62 }
 0x14d   : > { %6412 = vmatprep.mubr.msk.bf16.mxu0 %vm463_vm1, %v4929_v3 }
 0x154   : > { %6413 = vmatmul.mubr.msk.bf16.gmra.mrb[28].mxu0 %vm463_vm1, %v4931_v2 }
 0x155   : > { %6416 = vmatprep.mubr.msk.bf16.mxu0 %vm463_vm1, %v4933_v5 }
 0x15c   : > { %6417 = vmatmul.mubr.msk.bf16.gmra.mrb[32].mxu0 %vm463_vm1, %v4935_v8 }
 0x1bf   : > { %v6196_v36 = vpop.f32.mrb[0].mxu1 }
 0x1c0   : > { %v2202_v9 = vpop.f32.mrb[1].mxu1 }
 0x1c1   : > { %v6197_v10 = vpop.f32.mrb[2].mxu1 }
 0x1c2   : > { %v2205_v11 = vpop.f32.mrb[3].mxu1 }
 0x1c7   : > { %v6200_v12 = vpop.f32.mrb[4].mxu1 }
 0x1c8   : > { %v2218_v13 = vpop.f32.mrb[5].mxu1 }
 0x1c9   : > { %v6201_v14 = vpop.f32.mrb[6].mxu1 }
 0x1ca   : > { %v2221_v15 = vpop.f32.mrb[7].mxu1 }
 0x1cf   : > { %v6204_v16 = vpop.f32.mrb[8].mxu1 }
 0x1d0   : > { %v7545_v22 = vpop.f32.mrb[9].mxu1 }
 0x1d1   : > { %v7547_v17 = vpop.f32.mrb[10].mxu1 }
 0x1d2   : > { %v7549_v18 = vpop.f32.mrb[11].mxu1 }
 0x1d7   : > { %v7551_v19 = vpop.f32.mrb[12].mxu1 }
 0x1d8   : > { %v7553_v20 = vpop.f32.mrb[13].mxu1 }
 0x1d9   : > { %v7555_v21 = vpop.f32.mrb[14].mxu1 }
 0x1da   : > { %v7557_v23 = vpop.f32.mrb[15].mxu1 }
 0x1df   : > { %v7559_v24 = vpop.f32.mrb[16].mxu1 }
 0x1e0   : > { %v7561_v25 = vpop.f32.mrb[17].mxu1 }
 0x1e1   : > { %v7563_v26 = vpop.f32.mrb[18].mxu1 }
 0x1e2   : > { %v7565_v27 = vpop.f32.mrb[19].mxu1 }
 0x1ef   : > { %v6386_v28 = vpop.f32.mrb[0].mxu0 }
 0x1f0   : > { %v6422_v30 = vadd.f32 %v6386_v28, %v6196_v36  ;;  %v5027_v31 = vpop.f32.mrb[1].mxu0 }
 0x1f1   : > { %v6423_v33 = vadd.f32 %v5027_v31, %v2202_v9  ;;  %v6387_v34 = vpop.f32.mrb[2].mxu0 }
 0x1f2   : > { %v5287_v35 = vmul.f32 %v6422_v30, %v7570_v29  ;;  %v6424_v37 = vadd.f32 %v6387_v34, %v6197_v10  ;;  %v5030_v39 = vpop.f32.mrb[3].mxu0 }
 0x1f3   : > { %v5285_v7 = vmul.f32 %v6423_v33, %v7570_v29  ;;  %v6425_v57 = vadd.f32 %v5030_v39, %v2205_v11 }
 0x1f4   : > { %v5330_v41 = vadd.f32 %v7576_v32, %v5287_v35  ;;  %v5288_v42 = vmul.f32 %v6424_v37, %v7570_v29 }
 0x1f5   : > { %v5328_v43 = vadd.f32 %v7576_v32, %v5285_v7  ;;  %v5286_v44 = vmul.f32 %v6425_v57, %v7570_v29 }
 0x1f6   : > { %v5366_v45 = vmax.f32 %v5330_v41, 0.0  ;;  %v5331_v46 = vadd.f32 %v7576_v32, %v5288_v42 }
 0x1f7   : > { %v5364_v47 = vmax.f32 %v5328_v43, 0.0  ;;  %v5329_v48 = vadd.f32 %v7576_v32, %v5286_v44  ;;  %v6390_v49 = vpop.f32.mrb[4].mxu0 }
 0x1f8   : > { %5402 = vst [vmem:[%s7585_s27 + $0x10] sm:$0xff] %v5366_v45  ;;  %v5367_v50 = vmax.f32 %v5331_v46, 0.0  ;;  %v6426_v51 = vadd.f32 %v6390_v49, %v6200_v12  ;;  %v5043_v52 = vpop.f32.mrb[5].mxu0 }
 0x1f9   : > { %5400 = vst [vmem:[%s7585_s27] sm:$0xff] %v5364_v47  ;;  %v5365_v53 = vmax.f32 %v5329_v48, 0.0  ;;  %v6427_v54 = vadd.f32 %v5043_v52, %v2218_v13  ;;  %v6391_v55 = vpop.f32.mrb[6].mxu0 }
 0x1fa   : > { %5403 = vst [vmem:[%s7585_s27 + $0x18] sm:$0xff] %v5367_v50  ;;  %v5291_v56 = vmul.f32 %v6426_v51, %v7570_v29  ;;  %v6428_v58 = vadd.f32 %v6391_v55, %v6201_v14  ;;  %v5046_v59 = vpop.f32.mrb[7].mxu0 }
 0x1fb   : > { %5401 = vst [vmem:[%s7585_s27 + $0x8] sm:$0xff] %v5365_v53  ;;  %v5289_v40 = vmul.f32 %v6427_v54, %v7570_v29  ;;  %v6429_v60 = vadd.f32 %v5046_v59, %v2221_v15 }
 0x1fc   : > { %v5334_v61 = vadd.f32 %v7576_v32, %v5291_v56  ;;  %v5292_v62 = vmul.f32 %v6428_v58, %v7570_v29 }
 0x1fd   : > { %v5332_v63 = vadd.f32 %v7576_v32, %v5289_v40  ;;  %v5290_v3 = vmul.f32 %v6429_v60, %v7570_v29 }
 0x1fe   : > { %v5370_v0 = vmax.f32 %v5334_v61, 0.0  ;;  %v5335_v38 = vadd.f32 %v7576_v32, %v5292_v62 }
 0x1ff   : > { %v5368_v1 = vmax.f32 %v5332_v63, 0.0  ;;  %v5333_v2 = vadd.f32 %v7576_v32, %v5290_v3  ;;  %v6394_v4 = vpop.f32.mrb[8].mxu0 }
 0x200   : > { %5406 = vst [vmem:[%s7585_s27 + $0x30] sm:$0xff] %v5370_v0  ;;  %v5371_v5 = vmax.f32 %v5335_v38, 0.0  ;;  %v6430_v6 = vadd.f32 %v6394_v4, %v6204_v16  ;;  %v5059_v8 = vpop.f32.mrb[9].mxu0 }
 0x201   : > { %5404 = vst [vmem:[%s7585_s27 + $0x20] sm:$0xff] %v5368_v1  ;;  %v5369_v36 = vmax.f32 %v5333_v2, 0.0  ;;  %v6431_v9 = vadd.f32 %v5059_v8, %v7545_v22  ;;  %v6395_v10 = vpop.f32.mrb[10].mxu0 }
 0x202   : > { %5407 = vst [vmem:[%s7585_s27 + $0x38] sm:$0xff] %v5371_v5  ;;  %v5295_v11 = vmul.f32 %v6430_v6, %v7570_v29  ;;  %v6432_v12 = vadd.f32 %v6395_v10, %v7547_v17  ;;  %v5062_v13 = vpop.f32.mrb[11].mxu0 }
 0x203   : > { %5405 = vst [vmem:[%s7585_s27 + $0x28] sm:$0xff] %v5369_v36  ;;  %v5293_v14 = vmul.f32 %v6431_v9, %v7570_v29  ;;  %v6433_v15 = vadd.f32 %v5062_v13, %v7549_v18 }
 0x204   : > { %v5338_v16 = vadd.f32 %v7576_v32, %v5295_v11  ;;  %v5296_v22 = vmul.f32 %v6432_v12, %v7570_v29 }
 0x205   : > { %v5336_v31 = vadd.f32 %v7576_v32, %v5293_v14  ;;  %v5294_v17 = vmul.f32 %v6433_v15, %v7570_v29 }
 0x206   : > { %v5374_v34 = vmax.f32 %v5338_v16, 0.0  ;;  %v5339_v35 = vadd.f32 %v7576_v32, %v5296_v22 }
 0x207   : > { %v7612_v28 = vpop.f32.mrb[20].mxu1  ;;  %v5372_v37 = vmax.f32 %v5336_v31, 0.0  ;;  %v5337_v39 = vadd.f32 %v7576_v32, %v5294_v17  ;;  %v6398_v7 = vpop.f32.mrb[12].mxu0 }
 0x208   : > { %v7616_v30 = vpop.f32.mrb[21].mxu1  ;;  %5410 = vst [vmem:[%s7585_s27 + $0x50] sm:$0xff] %v5374_v34  ;;  %v5375_v57 = vmax.f32 %v5339_v35, 0.0  ;;  %v6434_v41 = vadd.f32 %v6398_v7, %v7551_v19  ;;  %v5075_v42 = vpop.f32.mrb[13].mxu0 }
 0x209   : > { %v7620_v33 = vpop.f32.mrb[22].mxu1  ;;  %5408 = vst [vmem:[%s7585_s27 + $0x40] sm:$0xff] %v5372_v37  ;;  %v5373_v43 = vmax.f32 %v5337_v39, 0.0  ;;  %v6435_v44 = vadd.f32 %v5075_v42, %v7553_v20  ;;  %v6399_v45 = vpop.f32.mrb[14].mxu0 }
 0x20a   : > { %v7623_v18 = vpop.f32.mrb[23].mxu1  ;;  %5411 = vst [vmem:[%s7585_s27 + $0x58] sm:$0xff] %v5375_v57  ;;  %v5299_v46 = vmul.f32 %v6434_v41, %v7570_v29  ;;  %v6436_v47 = vadd.f32 %v6399_v45, %v7555_v21  ;;  %v5078_v48 = vpop.f32.mrb[15].mxu0 }
 0x20b   : > { %5409 = vst [vmem:[%s7585_s27 + $0x48] sm:$0xff] %v5373_v43  ;;  %v5297_v49 = vmul.f32 %v6435_v44, %v7570_v29  ;;  %v6437_v50 = vadd.f32 %v5078_v48, %v7557_v23 }
 0x20c   : > { %v5342_v19 = vadd.f32 %v7576_v32, %v5299_v46  ;;  %v5300_v20 = vmul.f32 %v6436_v47, %v7570_v29 }
 0x20d   : > { %v5340_v53 = vadd.f32 %v7576_v32, %v5297_v49  ;;  %v5298_v21 = vmul.f32 %v6437_v50, %v7570_v29 }
 0x20e   : > { %v5378_v55 = vmax.f32 %v5342_v19, 0.0  ;;  %v5343_v56 = vadd.f32 %v7576_v32, %v5300_v20 }
 0x20f   : > { %v7636_v51 = vpop.f32.mrb[24].mxu1  ;;  %v5376_v58 = vmax.f32 %v5340_v53, 0.0  ;;  %v5341_v59 = vadd.f32 %v7576_v32, %v5298_v21  ;;  %v6402_v40 = vpop.f32.mrb[16].mxu0 }
 0x210   : > { %v7640_v52 = vpop.f32.mrb[25].mxu1  ;;  %5414 = vst [vmem:[%s7585_s27 + $0x70] sm:$0xff] %v5378_v55  ;;  %v5379_v60 = vmax.f32 %v5343_v56, 0.0  ;;  %v6438_v61 = vadd.f32 %v6402_v40, %v7559_v24  ;;  %v5091_v62 = vpop.f32.mrb[17].mxu0 }
 0x211   : > { %v7644_v54 = vpop.f32.mrb[26].mxu1  ;;  %5412 = vst [vmem:[%s7585_s27 + $0x60] sm:$0xff] %v5376_v58  ;;  %v5377_v63 = vmax.f32 %v5341_v59, 0.0  ;;  %v6439_v3 = vadd.f32 %v5091_v62, %v7561_v25  ;;  %v6403_v0 = vpop.f32.mrb[18].mxu0 }
 0x212   : > { %v7647_v23 = vpop.f32.mrb[27].mxu1  ;;  %5415 = vst [vmem:[%s7585_s27 + $0x78] sm:$0xff] %v5379_v60  ;;  %v5303_v38 = vmul.f32 %v6438_v61, %v7570_v29  ;;  %v6440_v1 = vadd.f32 %v6403_v0, %v7563_v26  ;;  %v5094_v2 = vpop.f32.mrb[19].mxu0 }
 0x213   : > { %5413 = vst [vmem:[%s7585_s27 + $0x68] sm:$0xff] %v5377_v63  ;;  %v5301_v4 = vmul.f32 %v6439_v3, %v7570_v29  ;;  %v6441_v5 = vadd.f32 %v5094_v2, %v7565_v27 }
 0x214   : > { %v5346_v24 = vadd.f32 %v7576_v32, %v5303_v38  ;;  %v5304_v25 = vmul.f32 %v6440_v1, %v7570_v29 }
 0x215   : > { %v5344_v36 = vadd.f32 %v7576_v32, %v5301_v4  ;;  %v5302_v26 = vmul.f32 %v6441_v5, %v7570_v29 }
 0x216   : > { %v5382_v10 = vmax.f32 %v5346_v24, 0.0  ;;  %v5347_v11 = vadd.f32 %v7576_v32, %v5304_v25 }
 0x217   : > { %v7660_v6 = vpop.f32.mrb[28].mxu1  ;;  %v5380_v12 = vmax.f32 %v5344_v36, 0.0  ;;  %v5345_v13 = vadd.f32 %v7576_v32, %v5302_v26  ;;  %v6406_v14 = vpop.f32.mrb[20].mxu0 }
 0x218   : > { %v7664_v8 = vpop.f32.mrb[29].mxu1  ;;  %5418 = vst [vmem:[%s7585_s27 + $0x90] sm:$0xff] %v5382_v10  ;;  %v5383_v15 = vmax.f32 %v5347_v11, 0.0  ;;  %v6442_v16 = vadd.f32 %v6406_v14, %v7612_v28  ;;  %v5107_v22 = vpop.f32.mrb[21].mxu0 }
 0x219   : > { %v7668_v9 = vpop.f32.mrb[30].mxu1  ;;  %5416 = vst [vmem:[%s7585_s27 + $0x80] sm:$0xff] %v5380_v12  ;;  %v5381_v31 = vmax.f32 %v5345_v13, 0.0  ;;  %v6443_v17 = vadd.f32 %v5107_v22, %v7616_v30  ;;  %v6407_v34 = vpop.f32.mrb[22].mxu0 }
 0x21a   : > { %v7671_v27 = vpop.f32.mrb[31].mxu1  ;;  %5419 = vst [vmem:[%s7585_s27 + $0x98] sm:$0xff] %v5383_v15  ;;  %v5307_v35 = vmul.f32 %v6442_v16, %v7570_v29  ;;  %v6444_v37 = vadd.f32 %v6407_v34, %v7620_v33  ;;  %v5110_v39 = vpop.f32.mrb[23].mxu0 }
 0x21b   : > { %5417 = vst [vmem:[%s7585_s27 + $0x88] sm:$0xff] %v5381_v31  ;;  %v5305_v7 = vmul.f32 %v6443_v17, %v7570_v29  ;;  %v6445_v57 = vadd.f32 %v5110_v39, %v7623_v18 }
 0x21c   : > { %v5350_v28 = vadd.f32 %v7576_v32, %v5307_v35  ;;  %v5308_v30 = vmul.f32 %v6444_v37, %v7570_v29 }
 0x21d   : > { %v5348_v43 = vadd.f32 %v7576_v32, %v5305_v7  ;;  %v5306_v33 = vmul.f32 %v6445_v57, %v7570_v29 }
 0x21e   : > { %v5386_v45 = vmax.f32 %v5350_v28, 0.0  ;;  %v5351_v46 = vadd.f32 %v7576_v32, %v5308_v30 }
 0x21f   : > { %v7684_v41 = vpop.f32.mrb[32].mxu1  ;;  %v5384_v47 = vmax.f32 %v5348_v43, 0.0  ;;  %v5349_v48 = vadd.f32 %v7576_v32, %v5306_v33  ;;  %v6410_v49 = vpop.f32.mrb[24].mxu0 }
 0x220   : > { %v7688_v42 = vpop.f32.mrb[33].mxu1  ;;  %5422 = vst [vmem:[%s7585_s27 + $0xb0] sm:$0xff] %v5386_v45  ;;  %v5387_v50 = vmax.f32 %v5351_v46, 0.0  ;;  %v6446_v19 = vadd.f32 %v6410_v49, %v7636_v51  ;;  %v5123_v20 = vpop.f32.mrb[25].mxu0 }
 0x221   : > { %v7692_v44 = vpop.f32.mrb[34].mxu1  ;;  %5420 = vst [vmem:[%s7585_s27 + $0xa0] sm:$0xff] %v5384_v47  ;;  %v5385_v53 = vmax.f32 %v5349_v48, 0.0  ;;  %v6447_v21 = vadd.f32 %v5123_v20, %v7640_v52  ;;  %v6411_v55 = vpop.f32.mrb[26].mxu0 }
 0x222   : > { %v7695_v18 = vpop.f32.mrb[35].mxu1  ;;  %5423 = vst [vmem:[%s7585_s27 + $0xb8] sm:$0xff] %v5387_v50  ;;  %v5311_v56 = vmul.f32 %v6446_v19, %v7570_v29  ;;  %v6448_v58 = vadd.f32 %v6411_v55, %v7644_v54  ;;  %v5126_v59 = vpop.f32.mrb[27].mxu0 }
 0x223   : > { %5421 = vst [vmem:[%s7585_s27 + $0xa8] sm:$0xff] %v5385_v53  ;;  %v5309_v40 = vmul.f32 %v6447_v21, %v7570_v29  ;;  %v6449_v60 = vadd.f32 %v5126_v59, %v7647_v23 }
 0x224   : > { %v5354_v51 = vadd.f32 %v7576_v32, %v5311_v56  ;;  %v5312_v61 = vmul.f32 %v6448_v58, %v7570_v29 }
 0x225   : > { %v5352_v52 = vadd.f32 %v7576_v32, %v5309_v40  ;;  %v5310_v62 = vmul.f32 %v6449_v60, %v7570_v29 }
 0x226   : > { %v5390_v63 = vmax.f32 %v5354_v51, 0.0  ;;  %v5355_v3 = vadd.f32 %v7576_v32, %v5312_v61 }
 0x227   : > { %v5388_v54 = vmax.f32 %v5352_v52, 0.0  ;;  %v5353_v0 = vadd.f32 %v7576_v32, %v5310_v62  ;;  %v6414_v38 = vpop.f32.mrb[28].mxu0 }
 0x228   : > { %5426 = vst [vmem:[%s7585_s27 + $0xd0] sm:$0xff] %v5390_v63  ;;  %v5391_v1 = vmax.f32 %v5355_v3, 0.0  ;;  %v6450_v23 = vadd.f32 %v6414_v38, %v7660_v6  ;;  %v5139_v2 = vpop.f32.mrb[29].mxu0 }
 0x229   : > { %5424 = vst [vmem:[%s7585_s27 + $0xc0] sm:$0xff] %v5388_v54  ;;  %v5389_v4 = vmax.f32 %v5353_v0, 0.0  ;;  %v6451_v5 = vadd.f32 %v5139_v2, %v7664_v8  ;;  %v6415_v24 = vpop.f32.mrb[30].mxu0 }
 0x22a   : > { %5427 = vst [vmem:[%s7585_s27 + $0xd8] sm:$0xff] %v5391_v1  ;;  %v5315_v25 = vmul.f32 %v6450_v23, %v7570_v29  ;;  %v6452_v36 = vadd.f32 %v6415_v24, %v7668_v9  ;;  %v5142_v26 = vpop.f32.mrb[31].mxu0 }
 0x22b   : > { %5425 = vst [vmem:[%s7585_s27 + $0xc8] sm:$0xff] %v5389_v4  ;;  %v5313_v10 = vmul.f32 %v6451_v5, %v7570_v29  ;;  %v6453_v11 = vadd.f32 %v5142_v26, %v7671_v27 }
 0x22c   : > { %v5358_v6 = vadd.f32 %v7576_v32, %v5315_v25  ;;  %v5316_v12 = vmul.f32 %v6452_v36, %v7570_v29 }
 0x22d   : > { %v5356_v8 = vadd.f32 %v7576_v32, %v5313_v10  ;;  %v5314_v13 = vmul.f32 %v6453_v11, %v7570_v29 }
 0x22e   : > { %v5394_v14 = vmax.f32 %v5358_v6, 0.0  ;;  %v5359_v15 = vadd.f32 %v7576_v32, %v5316_v12 }
 0x22f   : > { %v5392_v9 = vmax.f32 %v5356_v8, 0.0  ;;  %v5357_v16 = vadd.f32 %v7576_v32, %v5314_v13  ;;  %v6418_v22 = vpop.f32.mrb[32].mxu0 }
 0x230   : > { %5430 = vst [vmem:[%s7585_s27 + $0xf0] sm:$0xff] %v5394_v14  ;;  %v5395_v31 = vmax.f32 %v5359_v15, 0.0  ;;  %v6454_v27 = vadd.f32 %v6418_v22, %v7684_v41  ;;  %v5155_v17 = vpop.f32.mrb[33].mxu0 }
 0x231   : > { %5428 = vst [vmem:[%s7585_s27 + $0xe0] sm:$0xff] %v5392_v9  ;;  %v5393_v34 = vmax.f32 %v5357_v16, 0.0  ;;  %v6455_v35 = vadd.f32 %v5155_v17, %v7688_v42  ;;  %v6419_v37 = vpop.f32.mrb[34].mxu0 }
 0x232   : > { %5431 = vst [vmem:[%s7585_s27 + $0xf8] sm:$0xff] %v5395_v31  ;;  %v5319_v39 = vmul.f32 %v6454_v27, %v7570_v29  ;;  %v6456_v7 = vadd.f32 %v6419_v37, %v7692_v44  ;;  %v5158_v57 = vpop.f32.mrb[35].mxu0 }
 0x233   : > { %5429 = vst [vmem:[%s7585_s27 + $0xe8] sm:$0xff] %v5393_v34  ;;  %v5317_v28 = vmul.f32 %v6455_v35, %v7570_v29  ;;  %v6457_v41 = vadd.f32 %v5158_v57, %v7695_v18 }
 0x234   : > { %v5362_v30 = vadd.f32 %v7576_v32, %v5319_v39  ;;  %v5320_v42 = vmul.f32 %v6456_v7, %v7570_v29 }
 0x235   : > { %v5360_v43 = vadd.f32 %v7576_v32, %v5317_v28  ;;  %v5318_v33 = vmul.f32 %v6457_v41, %v7570_v29 }
 0x236   : > { %v5398_v45 = vmax.f32 %v5362_v30, 0.0  ;;  %v5363_v46 = vadd.f32 %v7576_v32, %v5320_v42 }
 0x237   : > { %v5396_v44 = vmax.f32 %v5360_v43, 0.0  ;;  %v5361_v47 = vadd.f32 %v7576_v32, %v5318_v33 }
 0x238   : > { %5434 = vst [vmem:[%s7585_s27 + $0x110] sm:$0xff] %v5398_v45  ;;  %v5399_v48 = vmax.f32 %v5363_v46, 0.0 }
 0x239   : > { %5432 = vst [vmem:[%s7585_s27 + $0x100] sm:$0xff] %v5396_v44  ;;  %v5397_v49 = vmax.f32 %v5361_v47, 0.0 }
 0x23a   : > { %5435 = vst [vmem:[%s7585_s27 + $0x118] sm:$0xff] %v5399_v48 }
 0x23b   : > { %5433 = vst [vmem:[%s7585_s27 + $0x108] sm:$0xff] %v5397_v49 }
 0x23c PF: > { %s14_s17 = sadd.s32 1, %s6939_s17   ;;  %s7764_s15 = smov %s6935_s16 }
 0x23d   : > { %p11_p5 = scmp.ge.s32.totalorder %s14_s17, 4   ;;  %s7765_s16 = smov %s7767_s18 }
 0x23f   :  { %13 = sbr.rel (!%p11_p5) target bundleno = 2 (0x2), region = 83 }

</bundles_post_ra>
